<compile_context>
chip_gen: v5e
topology: v5e:2x2
jax: 0.10.0
libtpu: 0.0.40
codegen_flags: <defaults>
</compile_context>

<pallas_src>
import jax
import jax.numpy as jnp
from jax.experimental import pallas as pl
from jax.experimental.pallas import tpu as pltpu


# ---------------------------------------------------------------------------
# Kernel factory: whole forward pass, whole batch, single invocation
# ---------------------------------------------------------------------------
def _make_kernel(B, L):
    N = B * L

    def kernel(x_ref,                               # SMEM (B, 6)
               w1_ref, b1_ref,                      # fc1: (6, 3, L), (3, L)
               c1a_w, c1a_b, c1b_w, c1b_b,          # conv1 (tap-flattened weights)
               w2a_ref, b2a_ref,                    # fc2 layer 0: (3, L, H0), (1, H0)
               w2b_ref, b2b_ref,                    # fc2 layer 1: (H0, H1), (1, H1)
               w2c_ref, b2c_ref,                    # fc2 layer 2: (3, H1, L), (3, N)
               c2a_w, c2a_b, c2b_w, c2b_b,          # conv2
               c3a_w, c3a_b, c3b_w, c3b_b,
               c3c_w, c3c_b, c3d_w, c3d_b,          # conv3
               o_ref):                              # VMEM (3, N)

        # ---- zero-pad masks, memoized per (offset, Cin); built once, reused ----
        mask_cache = {}

        def pad_mask(off, rows):
            key = (off, rows)
            if key not in mask_cache:
                lane = jax.lax.broadcasted_iota(jnp.int32, (rows, L), 1)
                valid = jnp.logical_and(lane + off >= 0, lane + off < L)
                m = valid.astype(jnp.float32)
                mask_cache[key] = jnp.concatenate([m] * B, axis=1)   # (rows, N)
            return mask_cache[key]

        def shift(x, off):
            """y[:, b*L+p] = x[:, b*L+p+off] if 0 <= p+off < L else 0 (static off)."""
            if off == 0:
                return x
            rolled = pltpu.roll(x, shift=(-off) % N, axis=1)
            return rolled * pad_mask(off, x.shape[0])

        def conv1d_same(x, w, b, kern, dil):
            """'same'-padded dilated Conv1d over the whole batch as ONE matmul.

            x: (Cin, N) value; w: (Cout, kern*Cin) tap-major value; b: (Cout, 1)."""
            center = (kern - 1) // 2
            xs = jnp.concatenate(
                [shift(x, (t - center) * dil) for t in range(kern)], axis=0)
            return jnp.dot(w, xs, preferred_element_type=jnp.float32) + b

        # ---- fc1: Linear(6 -> 3L) + ReLU, built directly in the planar layout ----
        w1_planes = [w1_ref[i] for i in range(6)]        # loaded once, hoisted
        b1 = b1_ref[...]
        parts = []
        for b in range(B):
            acc = b1
            for i in range(6):
                acc = acc + x_ref[b, i] * w1_planes[i]   # scalar (SMEM) x (3,L) FMA
            parts.append(acc)
        a = jnp.maximum(jnp.concatenate(parts, axis=-1), 0.0)       # (3, N)

        # ---- x = x + conv1(x) ----
        c = jnp.maximum(conv1d_same(a, c1a_w[...], c1a_b[...], 5, 1), 0.0)
        c = jnp.maximum(conv1d_same(c, c1b_w[...], c1b_b[...], 5, 1), 0.0)
        a = a + c

        # ---- fc2 MLP on flattened features, batched across samples (M = B) ----
        H0 = w2b_ref.shape[0]
        f = jnp.zeros((B, H0), jnp.float32)
        for ch in range(3):
            a_ch = jnp.concatenate(
                [a[ch:ch + 1, b * L:(b + 1) * L] for b in range(B)], axis=0)  # (B, L)
            f = f + jnp.dot(a_ch, w2a_ref[ch], preferred_element_type=jnp.float32)
        f = jnp.maximum(f + b2a_ref[...], 0.0)                                # (B, H0)
        g = jnp.maximum(
            jnp.dot(f, w2b_ref[...], preferred_element_type=jnp.float32) + b2b_ref[...],
            0.0)                                                              # (B, H1)
        rows = []
        for ch in range(3):
            oc = jnp.dot(g, w2c_ref[ch], preferred_element_type=jnp.float32)  # (B, L)
            rows.append(jnp.concatenate([oc[b:b + 1, :] for b in range(B)], axis=1))
        a = jnp.concatenate(rows, axis=0) + b2c_ref[...]                      # (3, N)

        # ---- x = x + conv2(x) ----
        c = jnp.maximum(conv1d_same(a, c2a_w[...], c2a_b[...], 3, 1), 0.0)
        c = conv1d_same(c, c2b_w[...], c2b_b[...], 3, 1)
        a = a + c

        # ---- x = x + conv3(x) ----
        c = jnp.maximum(conv1d_same(a, c3a_w[...], c3a_b[...], 3, 2), 0.0)
        c = jnp.maximum(conv1d_same(c, c3b_w[...], c3b_b[...], 5, 3), 0.0)
        c = jnp.maximum(conv1d_same(c, c3c_w[...], c3c_b[...], 5, 3), 0.0)
        c = conv1d_same(c, c3d_w[...], c3d_b[...], 3, 2)
        a = a + c

        o_ref[...] = a.astype(o_ref.dtype)       # single lane-dense (3, B*L) store

    return kernel


# ---------------------------------------------------------------------------
# Wrapper: weight re-layout (free, host side) + single pallas_call
# ---------------------------------------------------------------------------
def hybrid_shock_tube_forward(x, params, output_length):
    """x: (B, 6) f32.  params: PyTorch-convention weights (see __main__)."""
    (fc1_w, fc1_b, c1a_w, c1a_b, c1b_w, c1b_b,
     fc2a_w, fc2a_b, fc2b_w, fc2b_b, fc2c_w, fc2c_b,
     c2a_w, c2a_b, c2b_w, c2b_b,
     c3a_w, c3a_b, c3b_w, c3b_b, c3c_w, c3c_b, c3d_w, c3d_b) = params

    B = x.shape[0]
    L = output_length
    N = B * L
    H0 = fc2a_w.shape[0]
    H1 = fc2b_w.shape[0]

    def conv_args(w, b):
        # torch (Cout, Cin, K) -> tap-major flattened (Cout, K*Cin), bias (Cout, 1)
        cout, cin, k = w.shape
        return jnp.transpose(w, (0, 2, 1)).reshape(cout, k * cin), b.reshape(-1, 1)

    # fc weights re-arranged so the kernel works in the planar / lane-batched layout.
    w1_r = fc1_w.T.reshape(6, 3, L)                               # [i,c,l] = W1[c*L+l, i]
    b1_r = fc1_b.reshape(3, L)
    w2a_r = fc2a_w.T.reshape(3, L, H0)                            # [c,l,k] = W2a[k, c*L+l]
    b2a_r = fc2a_b.reshape(1, H0)
    w2b_r = fc2b_w.T                                              # (H0, H1)
    b2b_r = fc2b_b.reshape(1, H1)
    w2c_r = jnp.transpose(fc2c_w.reshape(3, L, H1), (0, 2, 1))    # [c,k,l] = W2c[c*L+l, k]
    b2c_r = jnp.tile(fc2c_b.reshape(3, L), (1, B))                # tiled over batch lanes

    args = [x, w1_r, b1_r,
            *conv_args(c1a_w, c1a_b), *conv_args(c1b_w, c1b_b),
            w2a_r, b2a_r, w2b_r, b2b_r, w2c_r, b2c_r,
            *conv_args(c2a_w, c2a_b), *conv_args(c2b_w, c2b_b),
            *conv_args(c3a_w, c3a_b), *conv_args(c3b_w, c3b_b),
            *conv_args(c3c_w, c3c_b), *conv_args(c3d_w, c3d_b)]

    smem = pl.BlockSpec(memory_space=pltpu.MemorySpace.SMEM)      # x: B*6 scalars
    vmem = pl.BlockSpec(memory_space=pltpu.MemorySpace.VMEM)
    in_specs = [smem] + [vmem] * (len(args) - 1)

    out = pl.pallas_call(
        _make_kernel(B, L),
        out_shape=jax.ShapeDtypeStruct((3, N), jnp.float32),
        in_specs=in_specs,
        out_specs=vmem,
    )(*args)
    # lane-batched (3, B*L) -> (B, 3, L): free layout plumbing outside the kernel
    return jnp.transpose(out.reshape(3, B, L), (1, 0, 2))


# ---------------------------------------------------------------------------
# Pure-JAX reference (independent math path: XLA matmuls + conv_general_dilated)
# ---------------------------------------------------------------------------
def hybrid_shock_tube_ref(x, params, output_length):
    (fc1_w, fc1_b, c1a_w, c1a_b, c1b_w, c1b_b,
     fc2a_w, fc2a_b, fc2b_w, fc2b_b, fc2c_w, fc2c_b,
     c2a_w, c2a_b, c2b_w, c2b_b,
     c3a_w, c3a_b, c3b_w, c3b_b, c3c_w, c3c_b, c3d_w, c3d_b) = params

    hi = jax.lax.Precision.HIGHEST
    B = x.shape[0]
    L = output_length

    def linear(h, w, b):
        return jnp.dot(h, w.T, precision=hi) + b

    def conv1d(h, w, b, dil):
        k = w.shape[-1]
        pad = dil * (k - 1) // 2
        y = jax.lax.conv_general_dilated(
            h, w, window_strides=(1,), padding=[(pad, pad)], rhs_dilation=(dil,),
            dimension_numbers=("NCH", "OIH", "NCH"), precision=hi)
        return y + b[None, :, None]

    h = jax.nn.relu(linear(x, fc1_w, fc1_b)).reshape(B, 3, L)
    c = jax.nn.relu(conv1d(h, c1a_w, c1a_b, 1))
    c = jax.nn.relu(conv1d(c, c1b_w, c1b_b, 1))
    h = h + c
    f = h.reshape(B, 3 * L)
    f = jax.nn.relu(linear(f, fc2a_w, fc2a_b))
    f = jax.nn.relu(linear(f, fc2b_w, fc2b_b))
    f = linear(f, fc2c_w, fc2c_b)
    h = f.reshape(B, 3, L)
    c = jax.nn.relu(conv1d(h, c2a_w, c2a_b, 1))
    c = conv1d(c, c2b_w, c2b_b, 1)
    h = h + c
    c = jax.nn.relu(conv1d(h, c3a_w, c3a_b, 2))
    c = jax.nn.relu(conv1d(c, c3b_w, c3b_b, 3))
    c = jax.nn.relu(conv1d(c, c3c_w, c3c_b, 3))
    c = conv1d(c, c3d_w, c3d_b, 2)
    return h + c


if __name__ == "__main__":
    B = 2            # batch
    L = 128          # output_length (small, lane-dense multiple of 128)
    CC = 8           # conv_channels (small)
    H0 = H1 = 128    # hidden_dims

    key = jax.random.PRNGKey(0)
    keys = jax.random.split(key, 14)
    x = jax.random.normal(keys[0], (B, 6), dtype=jnp.float32)

    def linear_params(k, fan_in, fan_out, const_bias=None):
        kw, kb = jax.random.split(k)
        bound = 1.0 / (fan_in ** 0.5)
        w = jax.random.uniform(kw, (fan_out, fan_in), jnp.float32, -bound, bound)
        b = (jnp.full((fan_out,), const_bias, jnp.float32) if const_bias is not None
             else jax.random.uniform(kb, (fan_out,), jnp.float32, -bound, bound))
        return w, b

    def conv_params(k, cin, cout, kern):
        kw, kb = jax.random.split(k)
        bound = 1.0 / ((cin * kern) ** 0.5)
        w = jax.random.uniform(kw, (cout, cin, kern), jnp.float32, -bound, bound)
        b = jax.random.uniform(kb, (cout,), jnp.float32, -bound, bound)
        return w, b

    fc1 = linear_params(keys[1], 6, 3 * L)
    c1a = conv_params(keys[2], 3, CC, 5)
    c1b = conv_params(keys[3], CC, 3, 5)
    # fc2 Linear layers carry the module's init_weights_constant bias = 0.1
    fc2a = linear_params(keys[4], 3 * L, H0, const_bias=0.1)
    fc2b = linear_params(keys[5], H0, H1, const_bias=0.1)
    fc2c = linear_params(keys[6], H1, 3 * L, const_bias=0.1)
    c2a = conv_params(keys[7], 3, CC, 3)
    c2b = conv_params(keys[8], CC, 3, 3)
    c3a = conv_params(keys[9], 3, CC, 3)
    c3b = conv_params(keys[10], CC, 2 * CC, 5)
    c3c = conv_params(keys[11], 2 * CC, CC, 5)
    c3d = conv_params(keys[12], CC, 3, 3)

    params = (*fc1, *c1a, *c1b, *fc2a, *fc2b, *fc2c,
              *c2a, *c2b, *c3a, *c3b, *c3c, *c3d)

    out = hybrid_shock_tube_forward(x, params, L)
    out = jax.block_until_ready(out)

    ref = hybrid_shock_tube_ref(x, params, L)
    assert out.shape == (B, 3, L), out.shape
    max_err = float(jnp.max(jnp.abs(out - ref)))
    assert bool(jnp.allclose(out, ref, atol=1e-3, rtol=1e-3)), (
        f"kernel output mismatch vs reference, max abs err = {max_err}")

    print("KERNEL_OK")
</pallas_src>

<mosaic_0001>
module attributes {stable_mosaic.version = 11 : i64} {
  func.func @kernel(%arg0: memref<2x6xf32, #tpu.memory_space<smem>>, %arg1: memref<6x3x128xf32, #tpu.memory_space<vmem>>, %arg2: memref<3x128xf32, #tpu.memory_space<vmem>>, %arg3: memref<8x15xf32, #tpu.memory_space<vmem>>, %arg4: memref<8x1xf32, #tpu.memory_space<vmem>>, %arg5: memref<3x40xf32, #tpu.memory_space<vmem>>, %arg6: memref<3x1xf32, #tpu.memory_space<vmem>>, %arg7: memref<3x128x128xf32, #tpu.memory_space<vmem>>, %arg8: memref<1x128xf32, #tpu.memory_space<vmem>>, %arg9: memref<128x128xf32, #tpu.memory_space<vmem>>, %arg10: memref<1x128xf32, #tpu.memory_space<vmem>>, %arg11: memref<3x128x128xf32, #tpu.memory_space<vmem>>, %arg12: memref<3x256xf32, #tpu.memory_space<vmem>>, %arg13: memref<8x9xf32, #tpu.memory_space<vmem>>, %arg14: memref<8x1xf32, #tpu.memory_space<vmem>>, %arg15: memref<3x24xf32, #tpu.memory_space<vmem>>, %arg16: memref<3x1xf32, #tpu.memory_space<vmem>>, %arg17: memref<8x9xf32, #tpu.memory_space<vmem>>, %arg18: memref<8x1xf32, #tpu.memory_space<vmem>>, %arg19: memref<16x40xf32, #tpu.memory_space<vmem>>, %arg20: memref<16x1xf32, #tpu.memory_space<vmem>>, %arg21: memref<8x80xf32, #tpu.memory_space<vmem>>, %arg22: memref<8x1xf32, #tpu.memory_space<vmem>>, %arg23: memref<3x24xf32, #tpu.memory_space<vmem>>, %arg24: memref<3x1xf32, #tpu.memory_space<vmem>>, %arg25: memref<3x256xf32, #tpu.memory_space<vmem>>) attributes {dimension_semantics = [], scalar_prefetch = 0 : i64, scratch_operands = 0 : i64, tpu.core_type = #tpu.core_type<tc>} {
    %c0 = arith.constant 0 : index
    %c0_0 = arith.constant 0 : index
    %c0_1 = arith.constant 0 : index
    %0 = vector.load %arg1[%c0, %c0_0, %c0_1] : memref<6x3x128xf32, #tpu.memory_space<vmem>>, vector<1x3x128xf32>
    %1 = vector.shape_cast %0 : vector<1x3x128xf32> to vector<3x128xf32>
    %c1 = arith.constant 1 : index
    %c0_2 = arith.constant 0 : index
    %c0_3 = arith.constant 0 : index
    %2 = vector.load %arg1[%c1, %c0_2, %c0_3] : memref<6x3x128xf32, #tpu.memory_space<vmem>>, vector<1x3x128xf32>
    %3 = vector.shape_cast %2 : vector<1x3x128xf32> to vector<3x128xf32>
    %c2 = arith.constant 2 : index
    %c0_4 = arith.constant 0 : index
    %c0_5 = arith.constant 0 : index
    %4 = vector.load %arg1[%c2, %c0_4, %c0_5] : memref<6x3x128xf32, #tpu.memory_space<vmem>>, vector<1x3x128xf32>
    %5 = vector.shape_cast %4 : vector<1x3x128xf32> to vector<3x128xf32>
    %c3 = arith.constant 3 : index
    %c0_6 = arith.constant 0 : index
    %c0_7 = arith.constant 0 : index
    %6 = vector.load %arg1[%c3, %c0_6, %c0_7] : memref<6x3x128xf32, #tpu.memory_space<vmem>>, vector<1x3x128xf32>
    %7 = vector.shape_cast %6 : vector<1x3x128xf32> to vector<3x128xf32>
    %c4 = arith.constant 4 : index
    %c0_8 = arith.constant 0 : index
    %c0_9 = arith.constant 0 : index
    %8 = vector.load %arg1[%c4, %c0_8, %c0_9] : memref<6x3x128xf32, #tpu.memory_space<vmem>>, vector<1x3x128xf32>
    %9 = vector.shape_cast %8 : vector<1x3x128xf32> to vector<3x128xf32>
    %c5 = arith.constant 5 : index
    %c0_10 = arith.constant 0 : index
    %c0_11 = arith.constant 0 : index
    %10 = vector.load %arg1[%c5, %c0_10, %c0_11] : memref<6x3x128xf32, #tpu.memory_space<vmem>>, vector<1x3x128xf32>
    %11 = vector.shape_cast %10 : vector<1x3x128xf32> to vector<3x128xf32>
    %c0_12 = arith.constant 0 : index
    %c0_13 = arith.constant 0 : index
    %12 = vector.load %arg2[%c0_12, %c0_13] : memref<3x128xf32, #tpu.memory_space<vmem>>, vector<3x128xf32>
    %c0_14 = arith.constant 0 : index
    %c0_15 = arith.constant 0 : index
    %13 = memref.load %arg0[%c0_14, %c0_15] : memref<2x6xf32, #tpu.memory_space<smem>>
    %14 = vector.broadcast %13 : f32 to vector<3x128xf32>
    %15 = arith.mulf %14, %1 : vector<3x128xf32>
    %16 = arith.addf %12, %15 : vector<3x128xf32>
    %c0_16 = arith.constant 0 : index
    %c1_17 = arith.constant 1 : index
    %17 = memref.load %arg0[%c0_16, %c1_17] : memref<2x6xf32, #tpu.memory_space<smem>>
    %18 = vector.broadcast %17 : f32 to vector<3x128xf32>
    %19 = arith.mulf %18, %3 : vector<3x128xf32>
    %20 = arith.addf %16, %19 : vector<3x128xf32>
    %c0_18 = arith.constant 0 : index
    %c2_19 = arith.constant 2 : index
    %21 = memref.load %arg0[%c0_18, %c2_19] : memref<2x6xf32, #tpu.memory_space<smem>>
    %22 = vector.broadcast %21 : f32 to vector<3x128xf32>
    %23 = arith.mulf %22, %5 : vector<3x128xf32>
    %24 = arith.addf %20, %23 : vector<3x128xf32>
    %c0_20 = arith.constant 0 : index
    %c3_21 = arith.constant 3 : index
    %25 = memref.load %arg0[%c0_20, %c3_21] : memref<2x6xf32, #tpu.memory_space<smem>>
    %26 = vector.broadcast %25 : f32 to vector<3x128xf32>
    %27 = arith.mulf %26, %7 : vector<3x128xf32>
    %28 = arith.addf %24, %27 : vector<3x128xf32>
    %c0_22 = arith.constant 0 : index
    %c4_23 = arith.constant 4 : index
    %29 = memref.load %arg0[%c0_22, %c4_23] : memref<2x6xf32, #tpu.memory_space<smem>>
    %30 = vector.broadcast %29 : f32 to vector<3x128xf32>
    %31 = arith.mulf %30, %9 : vector<3x128xf32>
    %32 = arith.addf %28, %31 : vector<3x128xf32>
    %c0_24 = arith.constant 0 : index
    %c5_25 = arith.constant 5 : index
    %33 = memref.load %arg0[%c0_24, %c5_25] : memref<2x6xf32, #tpu.memory_space<smem>>
    %34 = vector.broadcast %33 : f32 to vector<3x128xf32>
    %35 = arith.mulf %34, %11 : vector<3x128xf32>
    %36 = arith.addf %32, %35 : vector<3x128xf32>
    %c1_26 = arith.constant 1 : index
    %c0_27 = arith.constant 0 : index
    %37 = memref.load %arg0[%c1_26, %c0_27] : memref<2x6xf32, #tpu.memory_space<smem>>
    %38 = vector.broadcast %37 : f32 to vector<3x128xf32>
    %39 = arith.mulf %38, %1 : vector<3x128xf32>
    %40 = arith.addf %12, %39 : vector<3x128xf32>
    %c1_28 = arith.constant 1 : index
    %c1_29 = arith.constant 1 : index
    %41 = memref.load %arg0[%c1_28, %c1_29] : memref<2x6xf32, #tpu.memory_space<smem>>
    %42 = vector.broadcast %41 : f32 to vector<3x128xf32>
    %43 = arith.mulf %42, %3 : vector<3x128xf32>
    %44 = arith.addf %40, %43 : vector<3x128xf32>
    %c1_30 = arith.constant 1 : index
    %c2_31 = arith.constant 2 : index
    %45 = memref.load %arg0[%c1_30, %c2_31] : memref<2x6xf32, #tpu.memory_space<smem>>
    %46 = vector.broadcast %45 : f32 to vector<3x128xf32>
    %47 = arith.mulf %46, %5 : vector<3x128xf32>
    %48 = arith.addf %44, %47 : vector<3x128xf32>
    %c1_32 = arith.constant 1 : index
    %c3_33 = arith.constant 3 : index
    %49 = memref.load %arg0[%c1_32, %c3_33] : memref<2x6xf32, #tpu.memory_space<smem>>
    %50 = vector.broadcast %49 : f32 to vector<3x128xf32>
    %51 = arith.mulf %50, %7 : vector<3x128xf32>
    %52 = arith.addf %48, %51 : vector<3x128xf32>
    %c1_34 = arith.constant 1 : index
    %c4_35 = arith.constant 4 : index
    %53 = memref.load %arg0[%c1_34, %c4_35] : memref<2x6xf32, #tpu.memory_space<smem>>
    %54 = vector.broadcast %53 : f32 to vector<3x128xf32>
    %55 = arith.mulf %54, %9 : vector<3x128xf32>
    %56 = arith.addf %52, %55 : vector<3x128xf32>
    %c1_36 = arith.constant 1 : index
    %c5_37 = arith.constant 5 : index
    %57 = memref.load %arg0[%c1_36, %c5_37] : memref<2x6xf32, #tpu.memory_space<smem>>
    %58 = vector.broadcast %57 : f32 to vector<3x128xf32>
    %59 = arith.mulf %58, %11 : vector<3x128xf32>
    %60 = arith.addf %56, %59 : vector<3x128xf32>
    %61 = tpu.concatenate %36, %60 in 1 : vector<3x128xf32>, vector<3x128xf32> -> vector<3x256xf32>
    %cst = arith.constant 0.000000e+00 : f32
    %62 = vector.broadcast %cst : f32 to vector<3x256xf32>
    %63 = arith.maximumf %61, %62 : vector<3x256xf32>
    %c0_38 = arith.constant 0 : index
    %c0_39 = arith.constant 0 : index
    %64 = vector.load %arg3[%c0_38, %c0_39] : memref<8x15xf32, #tpu.memory_space<vmem>>, vector<8x15xf32>
    %c0_40 = arith.constant 0 : index
    %c0_41 = arith.constant 0 : index
    %65 = vector.load %arg4[%c0_40, %c0_41] : memref<8x1xf32, #tpu.memory_space<vmem>>, vector<8x1xf32>
    %c2_i32 = arith.constant 2 : i32
    %66 = tpu.dynamic_rotate %63 by %c2_i32 dim 1 : vector<3x256xf32>, i32 -> vector<3x256xf32>
    %67 = tpu.iota {dimensions = array<i32: 1>} : vector<3x128xi32>
    %c-2_i32 = arith.constant -2 : i32
    %68 = vector.broadcast %c-2_i32 : i32 to vector<3x128xi32>
    %69 = arith.addi %67, %68 : vector<3x128xi32>
    %c0_i32 = arith.constant 0 : i32
    %70 = vector.broadcast %c0_i32 : i32 to vector<3x128xi32>
    %71 = arith.cmpi sge, %69, %70 : vector<3x128xi32>
    %c-2_i32_42 = arith.constant -2 : i32
    %72 = vector.broadcast %c-2_i32_42 : i32 to vector<3x128xi32>
    %73 = arith.addi %67, %72 : vector<3x128xi32>
    %c128_i32 = arith.constant 128 : i32
    %74 = vector.broadcast %c128_i32 : i32 to vector<3x128xi32>
    %75 = arith.cmpi slt, %73, %74 : vector<3x128xi32>
    %76 = arith.andi %71, %75 : vector<3x128xi1>
    %77 = arith.extui %76 : vector<3x128xi1> to vector<3x128xi32>
    %78 = arith.sitofp %77 : vector<3x128xi32> to vector<3x128xf32>
    %79 = tpu.concatenate %78, %78 in 1 : vector<3x128xf32>, vector<3x128xf32> -> vector<3x256xf32>
    %80 = arith.mulf %66, %79 : vector<3x256xf32>
    %c1_i32 = arith.constant 1 : i32
    %81 = tpu.dynamic_rotate %63 by %c1_i32 dim 1 : vector<3x256xf32>, i32 -> vector<3x256xf32>
    %82 = tpu.iota {dimensions = array<i32: 1>} : vector<3x128xi32>
    %c-1_i32 = arith.constant -1 : i32
    %83 = vector.broadcast %c-1_i32 : i32 to vector<3x128xi32>
    %84 = arith.addi %82, %83 : vector<3x128xi32>
    %c0_i32_43 = arith.constant 0 : i32
    %85 = vector.broadcast %c0_i32_43 : i32 to vector<3x128xi32>
    %86 = arith.cmpi sge, %84, %85 : vector<3x128xi32>
    %c-1_i32_44 = arith.constant -1 : i32
    %87 = vector.broadcast %c-1_i32_44 : i32 to vector<3x128xi32>
    %88 = arith.addi %82, %87 : vector<3x128xi32>
    %c128_i32_45 = arith.constant 128 : i32
    %89 = vector.broadcast %c128_i32_45 : i32 to vector<3x128xi32>
    %90 = arith.cmpi slt, %88, %89 : vector<3x128xi32>
    %91 = arith.andi %86, %90 : vector<3x128xi1>
    %92 = arith.extui %91 : vector<3x128xi1> to vector<3x128xi32>
    %93 = arith.sitofp %92 : vector<3x128xi32> to vector<3x128xf32>
    %94 = tpu.concatenate %93, %93 in 1 : vector<3x128xf32>, vector<3x128xf32> -> vector<3x256xf32>
    %95 = arith.mulf %81, %94 : vector<3x256xf32>
    %c255_i32 = arith.constant 255 : i32
    %96 = tpu.dynamic_rotate %63 by %c255_i32 dim 1 : vector<3x256xf32>, i32 -> vector<3x256xf32>
    %97 = tpu.iota {dimensions = array<i32: 1>} : vector<3x128xi32>
    %c1_i32_46 = arith.constant 1 : i32
    %98 = vector.broadcast %c1_i32_46 : i32 to vector<3x128xi32>
    %99 = arith.addi %97, %98 : vector<3x128xi32>
    %c0_i32_47 = arith.constant 0 : i32
    %100 = vector.broadcast %c0_i32_47 : i32 to vector<3x128xi32>
    %101 = arith.cmpi sge, %99, %100 : vector<3x128xi32>
    %c1_i32_48 = arith.constant 1 : i32
    %102 = vector.broadcast %c1_i32_48 : i32 to vector<3x128xi32>
    %103 = arith.addi %97, %102 : vector<3x128xi32>
    %c128_i32_49 = arith.constant 128 : i32
    %104 = vector.broadcast %c128_i32_49 : i32 to vector<3x128xi32>
    %105 = arith.cmpi slt, %103, %104 : vector<3x128xi32>
    %106 = arith.andi %101, %105 : vector<3x128xi1>
    %107 = arith.extui %106 : vector<3x128xi1> to vector<3x128xi32>
    %108 = arith.sitofp %107 : vector<3x128xi32> to vector<3x128xf32>
    %109 = tpu.concatenate %108, %108 in 1 : vector<3x128xf32>, vector<3x128xf32> -> vector<3x256xf32>
    %110 = arith.mulf %96, %109 : vector<3x256xf32>
    %c254_i32 = arith.constant 254 : i32
    %111 = tpu.dynamic_rotate %63 by %c254_i32 dim 1 : vector<3x256xf32>, i32 -> vector<3x256xf32>
    %112 = tpu.iota {dimensions = array<i32: 1>} : vector<3x128xi32>
    %c2_i32_50 = arith.constant 2 : i32
    %113 = vector.broadcast %c2_i32_50 : i32 to vector<3x128xi32>
    %114 = arith.addi %112, %113 : vector<3x128xi32>
    %c0_i32_51 = arith.constant 0 : i32
    %115 = vector.broadcast %c0_i32_51 : i32 to vector<3x128xi32>
    %116 = arith.cmpi sge, %114, %115 : vector<3x128xi32>
    %c2_i32_52 = arith.constant 2 : i32
    %117 = vector.broadcast %c2_i32_52 : i32 to vector<3x128xi32>
    %118 = arith.addi %112, %117 : vector<3x128xi32>
    %c128_i32_53 = arith.constant 128 : i32
    %119 = vector.broadcast %c128_i32_53 : i32 to vector<3x128xi32>
    %120 = arith.cmpi slt, %118, %119 : vector<3x128xi32>
    %121 = arith.andi %116, %120 : vector<3x128xi1>
    %122 = arith.extui %121 : vector<3x128xi1> to vector<3x128xi32>
    %123 = arith.sitofp %122 : vector<3x128xi32> to vector<3x128xf32>
    %124 = tpu.concatenate %123, %123 in 1 : vector<3x128xf32>, vector<3x128xf32> -> vector<3x256xf32>
    %125 = arith.mulf %111, %124 : vector<3x256xf32>
    %126 = tpu.concatenate %80, %95, %63, %110, %125 in 0 : vector<3x256xf32>, vector<3x256xf32>, vector<3x256xf32>, vector<3x256xf32>, vector<3x256xf32> -> vector<15x256xf32>
    %cst_54 = arith.constant dense<0.000000e+00> : vector<8x256xf32>
    %127 = tpu.matmul %64, %126, %cst_54 {dimension_numbers = #tpu.dot_dimension_numbers<[1], [0], [0], [1], [0, 0, 1, 1], [], []>} : vector<8x15xf32>, vector<15x256xf32>, vector<8x256xf32> -> vector<8x256xf32>
    %128 = vector.broadcast %65 : vector<8x1xf32> to vector<8x256xf32>
    %129 = arith.addf %127, %128 : vector<8x256xf32>
    %cst_55 = arith.constant 0.000000e+00 : f32
    %130 = vector.broadcast %cst_55 : f32 to vector<8x256xf32>
    %131 = arith.maximumf %129, %130 : vector<8x256xf32>
    %c0_56 = arith.constant 0 : index
    %c0_57 = arith.constant 0 : index
    %132 = vector.load %arg5[%c0_56, %c0_57] : memref<3x40xf32, #tpu.memory_space<vmem>>, vector<3x40xf32>
    %c0_58 = arith.constant 0 : index
    %c0_59 = arith.constant 0 : index
    %133 = vector.load %arg6[%c0_58, %c0_59] : memref<3x1xf32, #tpu.memory_space<vmem>>, vector<3x1xf32>
    %c2_i32_60 = arith.constant 2 : i32
    %134 = tpu.dynamic_rotate %131 by %c2_i32_60 dim 1 : vector<8x256xf32>, i32 -> vector<8x256xf32>
    %135 = tpu.iota {dimensions = array<i32: 1>} : vector<8x128xi32>
    %c-2_i32_61 = arith.constant -2 : i32
    %136 = vector.broadcast %c-2_i32_61 : i32 to vector<8x128xi32>
    %137 = arith.addi %135, %136 : vector<8x128xi32>
    %c0_i32_62 = arith.constant 0 : i32
    %138 = vector.broadcast %c0_i32_62 : i32 to vector<8x128xi32>
    %139 = arith.cmpi sge, %137, %138 : vector<8x128xi32>
    %c-2_i32_63 = arith.constant -2 : i32
    %140 = vector.broadcast %c-2_i32_63 : i32 to vector<8x128xi32>
    %141 = arith.addi %135, %140 : vector<8x128xi32>
    %c128_i32_64 = arith.constant 128 : i32
    %142 = vector.broadcast %c128_i32_64 : i32 to vector<8x128xi32>
    %143 = arith.cmpi slt, %141, %142 : vector<8x128xi32>
    %144 = arith.andi %139, %143 : vector<8x128xi1>
    %145 = arith.extui %144 : vector<8x128xi1> to vector<8x128xi32>
    %146 = arith.sitofp %145 : vector<8x128xi32> to vector<8x128xf32>
    %147 = tpu.concatenate %146, %146 in 1 : vector<8x128xf32>, vector<8x128xf32> -> vector<8x256xf32>
    %148 = arith.mulf %134, %147 : vector<8x256xf32>
    %c1_i32_65 = arith.constant 1 : i32
    %149 = tpu.dynamic_rotate %131 by %c1_i32_65 dim 1 : vector<8x256xf32>, i32 -> vector<8x256xf32>
    %150 = tpu.iota {dimensions = array<i32: 1>} : vector<8x128xi32>
    %c-1_i32_66 = arith.constant -1 : i32
    %151 = vector.broadcast %c-1_i32_66 : i32 to vector<8x128xi32>
    %152 = arith.addi %150, %151 : vector<8x128xi32>
    %c0_i32_67 = arith.constant 0 : i32
    %153 = vector.broadcast %c0_i32_67 : i32 to vector<8x128xi32>
    %154 = arith.cmpi sge, %152, %153 : vector<8x128xi32>
    %c-1_i32_68 = arith.constant -1 : i32
    %155 = vector.broadcast %c-1_i32_68 : i32 to vector<8x128xi32>
    %156 = arith.addi %150, %155 : vector<8x128xi32>
    %c128_i32_69 = arith.constant 128 : i32
    %157 = vector.broadcast %c128_i32_69 : i32 to vector<8x128xi32>
    %158 = arith.cmpi slt, %156, %157 : vector<8x128xi32>
    %159 = arith.andi %154, %158 : vector<8x128xi1>
    %160 = arith.extui %159 : vector<8x128xi1> to vector<8x128xi32>
    %161 = arith.sitofp %160 : vector<8x128xi32> to vector<8x128xf32>
    %162 = tpu.concatenate %161, %161 in 1 : vector<8x128xf32>, vector<8x128xf32> -> vector<8x256xf32>
    %163 = arith.mulf %149, %162 : vector<8x256xf32>
    %c255_i32_70 = arith.constant 255 : i32
    %164 = tpu.dynamic_rotate %131 by %c255_i32_70 dim 1 : vector<8x256xf32>, i32 -> vector<8x256xf32>
    %165 = tpu.iota {dimensions = array<i32: 1>} : vector<8x128xi32>
    %c1_i32_71 = arith.constant 1 : i32
    %166 = vector.broadcast %c1_i32_71 : i32 to vector<8x128xi32>
    %167 = arith.addi %165, %166 : vector<8x128xi32>
    %c0_i32_72 = arith.constant 0 : i32
    %168 = vector.broadcast %c0_i32_72 : i32 to vector<8x128xi32>
    %169 = arith.cmpi sge, %167, %168 : vector<8x128xi32>
    %c1_i32_73 = arith.constant 1 : i32
    %170 = vector.broadcast %c1_i32_73 : i32 to vector<8x128xi32>
    %171 = arith.addi %165, %170 : vector<8x128xi32>
    %c128_i32_74 = arith.constant 128 : i32
    %172 = vector.broadcast %c128_i32_74 : i32 to vector<8x128xi32>
    %173 = arith.cmpi slt, %171, %172 : vector<8x128xi32>
    %174 = arith.andi %169, %173 : vector<8x128xi1>
    %175 = arith.extui %174 : vector<8x128xi1> to vector<8x128xi32>
    %176 = arith.sitofp %175 : vector<8x128xi32> to vector<8x128xf32>
    %177 = tpu.concatenate %176, %176 in 1 : vector<8x128xf32>, vector<8x128xf32> -> vector<8x256xf32>
    %178 = arith.mulf %164, %177 : vector<8x256xf32>
    %c254_i32_75 = arith.constant 254 : i32
    %179 = tpu.dynamic_rotate %131 by %c254_i32_75 dim 1 : vector<8x256xf32>, i32 -> vector<8x256xf32>
    %180 = tpu.iota {dimensions = array<i32: 1>} : vector<8x128xi32>
    %c2_i32_76 = arith.constant 2 : i32
    %181 = vector.broadcast %c2_i32_76 : i32 to vector<8x128xi32>
    %182 = arith.addi %180, %181 : vector<8x128xi32>
    %c0_i32_77 = arith.constant 0 : i32
    %183 = vector.broadcast %c0_i32_77 : i32 to vector<8x128xi32>
    %184 = arith.cmpi sge, %182, %183 : vector<8x128xi32>
    %c2_i32_78 = arith.constant 2 : i32
    %185 = vector.broadcast %c2_i32_78 : i32 to vector<8x128xi32>
    %186 = arith.addi %180, %185 : vector<8x128xi32>
    %c128_i32_79 = arith.constant 128 : i32
    %187 = vector.broadcast %c128_i32_79 : i32 to vector<8x128xi32>
    %188 = arith.cmpi slt, %186, %187 : vector<8x128xi32>
    %189 = arith.andi %184, %188 : vector<8x128xi1>
    %190 = arith.extui %189 : vector<8x128xi1> to vector<8x128xi32>
    %191 = arith.sitofp %190 : vector<8x128xi32> to vector<8x128xf32>
    %192 = tpu.concatenate %191, %191 in 1 : vector<8x128xf32>, vector<8x128xf32> -> vector<8x256xf32>
    %193 = arith.mulf %179, %192 : vector<8x256xf32>
    %194 = tpu.concatenate %148, %163, %131, %178, %193 in 0 : vector<8x256xf32>, vector<8x256xf32>, vector<8x256xf32>, vector<8x256xf32>, vector<8x256xf32> -> vector<40x256xf32>
    %cst_80 = arith.constant dense<0.000000e+00> : vector<3x256xf32>
    %195 = tpu.matmul %132, %194, %cst_80 {dimension_numbers = #tpu.dot_dimension_numbers<[1], [0], [0], [1], [0, 0, 1, 1], [], []>} : vector<3x40xf32>, vector<40x256xf32>, vector<3x256xf32> -> vector<3x256xf32>
    %196 = vector.broadcast %133 : vector<3x1xf32> to vector<3x256xf32>
    %197 = arith.addf %195, %196 : vector<3x256xf32>
    %cst_81 = arith.constant 0.000000e+00 : f32
    %198 = vector.broadcast %cst_81 : f32 to vector<3x256xf32>
    %199 = arith.maximumf %197, %198 : vector<3x256xf32>
    %200 = arith.addf %63, %199 : vector<3x256xf32>
    %cst_82 = arith.constant 0.000000e+00 : f32
    %201 = vector.broadcast %cst_82 : f32 to vector<2x128xf32>
    %202 = vector.extract_strided_slice %200 {offsets = [0, 0], sizes = [1, 128], strides = [1, 1]} : vector<3x256xf32> to vector<1x128xf32>
    %203 = vector.extract_strided_slice %200 {offsets = [0, 128], sizes = [1, 128], strides = [1, 1]} : vector<3x256xf32> to vector<1x128xf32>
    %204 = tpu.concatenate %202, %203 in 0 : vector<1x128xf32>, vector<1x128xf32> -> vector<2x128xf32>
    %c0_83 = arith.constant 0 : index
    %c0_84 = arith.constant 0 : index
    %c0_85 = arith.constant 0 : index
    %205 = vector.load %arg7[%c0_83, %c0_84, %c0_85] : memref<3x128x128xf32, #tpu.memory_space<vmem>>, vector<1x128x128xf32>
    %206 = vector.shape_cast %205 : vector<1x128x128xf32> to vector<128x128xf32>
    %cst_86 = arith.constant dense<0.000000e+00> : vector<2x128xf32>
    %207 = tpu.matmul %204, %206, %cst_86 {dimension_numbers = #tpu.dot_dimension_numbers<[1], [0], [0], [1], [0, 0, 1, 1], [], []>} : vector<2x128xf32>, vector<128x128xf32>, vector<2x128xf32> -> vector<2x128xf32>
    %208 = arith.addf %201, %207 : vector<2x128xf32>
    %209 = vector.extract_strided_slice %200 {offsets = [1, 0], sizes = [1, 128], strides = [1, 1]} : vector<3x256xf32> to vector<1x128xf32>
    %210 = vector.extract_strided_slice %200 {offsets = [1, 128], sizes = [1, 128], strides = [1, 1]} : vector<3x256xf32> to vector<1x128xf32>
    %211 = tpu.concatenate %209, %210 in 0 : vector<1x128xf32>, vector<1x128xf32> -> vector<2x128xf32>
    %c1_87 = arith.constant 1 : index
    %c0_88 = arith.constant 0 : index
    %c0_89 = arith.constant 0 : index
    %212 = vector.load %arg7[%c1_87, %c0_88, %c0_89] : memref<3x128x128xf32, #tpu.memory_space<vmem>>, vector<1x128x128xf32>
    %213 = vector.shape_cast %212 : vector<1x128x128xf32> to vector<128x128xf32>
    %cst_90 = arith.constant dense<0.000000e+00> : vector<2x128xf32>
    %214 = tpu.matmul %211, %213, %cst_90 {dimension_numbers = #tpu.dot_dimension_numbers<[1], [0], [0], [1], [0, 0, 1, 1], [], []>} : vector<2x128xf32>, vector<128x128xf32>, vector<2x128xf32> -> vector<2x128xf32>
    %215 = arith.addf %208, %214 : vector<2x128xf32>
    %216 = vector.extract_strided_slice %200 {offsets = [2, 0], sizes = [1, 128], strides = [1, 1]} : vector<3x256xf32> to vector<1x128xf32>
    %217 = vector.extract_strided_slice %200 {offsets = [2, 128], sizes = [1, 128], strides = [1, 1]} : vector<3x256xf32> to vector<1x128xf32>
    %218 = tpu.concatenate %216, %217 in 0 : vector<1x128xf32>, vector<1x128xf32> -> vector<2x128xf32>
    %c2_91 = arith.constant 2 : index
    %c0_92 = arith.constant 0 : index
    %c0_93 = arith.constant 0 : index
    %219 = vector.load %arg7[%c2_91, %c0_92, %c0_93] : memref<3x128x128xf32, #tpu.memory_space<vmem>>, vector<1x128x128xf32>
    %220 = vector.shape_cast %219 : vector<1x128x128xf32> to vector<128x128xf32>
    %cst_94 = arith.constant dense<0.000000e+00> : vector<2x128xf32>
    %221 = tpu.matmul %218, %220, %cst_94 {dimension_numbers = #tpu.dot_dimension_numbers<[1], [0], [0], [1], [0, 0, 1, 1], [], []>} : vector<2x128xf32>, vector<128x128xf32>, vector<2x128xf32> -> vector<2x128xf32>
    %222 = arith.addf %215, %221 : vector<2x128xf32>
    %c0_95 = arith.constant 0 : index
    %c0_96 = arith.constant 0 : index
    %223 = vector.load %arg8[%c0_95, %c0_96] : memref<1x128xf32, #tpu.memory_space<vmem>>, vector<1x128xf32>
    %224 = vector.broadcast %223 : vector<1x128xf32> to vector<2x128xf32>
    %225 = arith.addf %222, %224 : vector<2x128xf32>
    %cst_97 = arith.constant 0.000000e+00 : f32
    %226 = vector.broadcast %cst_97 : f32 to vector<2x128xf32>
    %227 = arith.maximumf %225, %226 : vector<2x128xf32>
    %c0_98 = arith.constant 0 : index
    %c0_99 = arith.constant 0 : index
    %228 = vector.load %arg9[%c0_98, %c0_99] : memref<128x128xf32, #tpu.memory_space<vmem>>, vector<128x128xf32>
    %cst_100 = arith.constant dense<0.000000e+00> : vector<2x128xf32>
    %229 = tpu.matmul %227, %228, %cst_100 {dimension_numbers = #tpu.dot_dimension_numbers<[1], [0], [0], [1], [0, 0, 1, 1], [], []>} : vector<2x128xf32>, vector<128x128xf32>, vector<2x128xf32> -> vector<2x128xf32>
    %c0_101 = arith.constant 0 : index
    %c0_102 = arith.constant 0 : index
    %230 = vector.load %arg10[%c0_101, %c0_102] : memref<1x128xf32, #tpu.memory_space<vmem>>, vector<1x128xf32>
    %231 = vector.broadcast %230 : vector<1x128xf32> to vector<2x128xf32>
    %232 = arith.addf %229, %231 : vector<2x128xf32>
    %cst_103 = arith.constant 0.000000e+00 : f32
    %233 = vector.broadcast %cst_103 : f32 to vector<2x128xf32>
    %234 = arith.maximumf %232, %233 : vector<2x128xf32>
    %c0_104 = arith.constant 0 : index
    %c0_105 = arith.constant 0 : index
    %c0_106 = arith.constant 0 : index
    %235 = vector.load %arg11[%c0_104, %c0_105, %c0_106] : memref<3x128x128xf32, #tpu.memory_space<vmem>>, vector<1x128x128xf32>
    %236 = vector.shape_cast %235 : vector<1x128x128xf32> to vector<128x128xf32>
    %cst_107 = arith.constant dense<0.000000e+00> : vector<2x128xf32>
    %237 = tpu.matmul %234, %236, %cst_107 {dimension_numbers = #tpu.dot_dimension_numbers<[1], [0], [0], [1], [0, 0, 1, 1], [], []>} : vector<2x128xf32>, vector<128x128xf32>, vector<2x128xf32> -> vector<2x128xf32>
    %238 = vector.extract_strided_slice %237 {offsets = [0, 0], sizes = [1, 128], strides = [1, 1]} : vector<2x128xf32> to vector<1x128xf32>
    %239 = vector.extract_strided_slice %237 {offsets = [1, 0], sizes = [1, 128], strides = [1, 1]} : vector<2x128xf32> to vector<1x128xf32>
    %240 = tpu.concatenate %238, %239 in 1 : vector<1x128xf32>, vector<1x128xf32> -> vector<1x256xf32>
    %c1_108 = arith.constant 1 : index
    %c0_109 = arith.constant 0 : index
    %c0_110 = arith.constant 0 : index
    %241 = vector.load %arg11[%c1_108, %c0_109, %c0_110] : memref<3x128x128xf32, #tpu.memory_space<vmem>>, vector<1x128x128xf32>
    %242 = vector.shape_cast %241 : vector<1x128x128xf32> to vector<128x128xf32>
    %cst_111 = arith.constant dense<0.000000e+00> : vector<2x128xf32>
    %243 = tpu.matmul %234, %242, %cst_111 {dimension_numbers = #tpu.dot_dimension_numbers<[1], [0], [0], [1], [0, 0, 1, 1], [], []>} : vector<2x128xf32>, vector<128x128xf32>, vector<2x128xf32> -> vector<2x128xf32>
    %244 = vector.extract_strided_slice %243 {offsets = [0, 0], sizes = [1, 128], strides = [1, 1]} : vector<2x128xf32> to vector<1x128xf32>
    %245 = vector.extract_strided_slice %243 {offsets = [1, 0], sizes = [1, 128], strides = [1, 1]} : vector<2x128xf32> to vector<1x128xf32>
    %246 = tpu.concatenate %244, %245 in 1 : vector<1x128xf32>, vector<1x128xf32> -> vector<1x256xf32>
    %c2_112 = arith.constant 2 : index
    %c0_113 = arith.constant 0 : index
    %c0_114 = arith.constant 0 : index
    %247 = vector.load %arg11[%c2_112, %c0_113, %c0_114] : memref<3x128x128xf32, #tpu.memory_space<vmem>>, vector<1x128x128xf32>
    %248 = vector.shape_cast %247 : vector<1x128x128xf32> to vector<128x128xf32>
    %cst_115 = arith.constant dense<0.000000e+00> : vector<2x128xf32>
    %249 = tpu.matmul %234, %248, %cst_115 {dimension_numbers = #tpu.dot_dimension_numbers<[1], [0], [0], [1], [0, 0, 1, 1], [], []>} : vector<2x128xf32>, vector<128x128xf32>, vector<2x128xf32> -> vector<2x128xf32>
    %250 = vector.extract_strided_slice %249 {offsets = [0, 0], sizes = [1, 128], strides = [1, 1]} : vector<2x128xf32> to vector<1x128xf32>
    %251 = vector.extract_strided_slice %249 {offsets = [1, 0], sizes = [1, 128], strides = [1, 1]} : vector<2x128xf32> to vector<1x128xf32>
    %252 = tpu.concatenate %250, %251 in 1 : vector<1x128xf32>, vector<1x128xf32> -> vector<1x256xf32>
    %253 = tpu.concatenate %240, %246, %252 in 0 : vector<1x256xf32>, vector<1x256xf32>, vector<1x256xf32> -> vector<3x256xf32>
    %c0_116 = arith.constant 0 : index
    %c0_117 = arith.constant 0 : index
    %254 = vector.load %arg12[%c0_116, %c0_117] : memref<3x256xf32, #tpu.memory_space<vmem>>, vector<3x256xf32>
    %255 = arith.addf %253, %254 : vector<3x256xf32>
    %c0_118 = arith.constant 0 : index
    %c0_119 = arith.constant 0 : index
    %256 = vector.load %arg13[%c0_118, %c0_119] : memref<8x9xf32, #tpu.memory_space<vmem>>, vector<8x9xf32>
    %c0_120 = arith.constant 0 : index
    %c0_121 = arith.constant 0 : index
    %257 = vector.load %arg14[%c0_120, %c0_121] : memref<8x1xf32, #tpu.memory_space<vmem>>, vector<8x1xf32>
    %c1_i32_122 = arith.constant 1 : i32
    %258 = tpu.dynamic_rotate %255 by %c1_i32_122 dim 1 : vector<3x256xf32>, i32 -> vector<3x256xf32>
    %259 = arith.mulf %258, %94 : vector<3x256xf32>
    %c255_i32_123 = arith.constant 255 : i32
    %260 = tpu.dynamic_rotate %255 by %c255_i32_123 dim 1 : vector<3x256xf32>, i32 -> vector<3x256xf32>
    %261 = arith.mulf %260, %109 : vector<3x256xf32>
    %262 = tpu.concatenate %259, %255, %261 in 0 : vector<3x256xf32>, vector<3x256xf32>, vector<3x256xf32> -> vector<9x256xf32>
    %cst_124 = arith.constant dense<0.000000e+00> : vector<8x256xf32>
    %263 = tpu.matmul %256, %262, %cst_124 {dimension_numbers = #tpu.dot_dimension_numbers<[1], [0], [0], [1], [0, 0, 1, 1], [], []>} : vector<8x9xf32>, vector<9x256xf32>, vector<8x256xf32> -> vector<8x256xf32>
    %264 = vector.broadcast %257 : vector<8x1xf32> to vector<8x256xf32>
    %265 = arith.addf %263, %264 : vector<8x256xf32>
    %cst_125 = arith.constant 0.000000e+00 : f32
    %266 = vector.broadcast %cst_125 : f32 to vector<8x256xf32>
    %267 = arith.maximumf %265, %266 : vector<8x256xf32>
    %c0_126 = arith.constant 0 : index
    %c0_127 = arith.constant 0 : index
    %268 = vector.load %arg15[%c0_126, %c0_127] : memref<3x24xf32, #tpu.memory_space<vmem>>, vector<3x24xf32>
    %c0_128 = arith.constant 0 : index
    %c0_129 = arith.constant 0 : index
    %269 = vector.load %arg16[%c0_128, %c0_129] : memref<3x1xf32, #tpu.memory_space<vmem>>, vector<3x1xf32>
    %c1_i32_130 = arith.constant 1 : i32
    %270 = tpu.dynamic_rotate %267 by %c1_i32_130 dim 1 : vector<8x256xf32>, i32 -> vector<8x256xf32>
    %271 = arith.mulf %270, %162 : vector<8x256xf32>
    %c255_i32_131 = arith.constant 255 : i32
    %272 = tpu.dynamic_rotate %267 by %c255_i32_131 dim 1 : vector<8x256xf32>, i32 -> vector<8x256xf32>
    %273 = arith.mulf %272, %177 : vector<8x256xf32>
    %274 = tpu.concatenate %271, %267, %273 in 0 : vector<8x256xf32>, vector<8x256xf32>, vector<8x256xf32> -> vector<24x256xf32>
    %cst_132 = arith.constant dense<0.000000e+00> : vector<3x256xf32>
    %275 = tpu.matmul %268, %274, %cst_132 {dimension_numbers = #tpu.dot_dimension_numbers<[1], [0], [0], [1], [0, 0, 1, 1], [], []>} : vector<3x24xf32>, vector<24x256xf32>, vector<3x256xf32> -> vector<3x256xf32>
    %276 = vector.broadcast %269 : vector<3x1xf32> to vector<3x256xf32>
    %277 = arith.addf %275, %276 : vector<3x256xf32>
    %278 = arith.addf %255, %277 : vector<3x256xf32>
    %c0_133 = arith.constant 0 : index
    %c0_134 = arith.constant 0 : index
    %279 = vector.load %arg17[%c0_133, %c0_134] : memref<8x9xf32, #tpu.memory_space<vmem>>, vector<8x9xf32>
    %c0_135 = arith.constant 0 : index
    %c0_136 = arith.constant 0 : index
    %280 = vector.load %arg18[%c0_135, %c0_136] : memref<8x1xf32, #tpu.memory_space<vmem>>, vector<8x1xf32>
    %c2_i32_137 = arith.constant 2 : i32
    %281 = tpu.dynamic_rotate %278 by %c2_i32_137 dim 1 : vector<3x256xf32>, i32 -> vector<3x256xf32>
    %282 = arith.mulf %281, %79 : vector<3x256xf32>
    %c254_i32_138 = arith.constant 254 : i32
    %283 = tpu.dynamic_rotate %278 by %c254_i32_138 dim 1 : vector<3x256xf32>, i32 -> vector<3x256xf32>
    %284 = arith.mulf %283, %124 : vector<3x256xf32>
    %285 = tpu.concatenate %282, %278, %284 in 0 : vector<3x256xf32>, vector<3x256xf32>, vector<3x256xf32> -> vector<9x256xf32>
    %cst_139 = arith.constant dense<0.000000e+00> : vector<8x256xf32>
    %286 = tpu.matmul %279, %285, %cst_139 {dimension_numbers = #tpu.dot_dimension_numbers<[1], [0], [0], [1], [0, 0, 1, 1], [], []>} : vector<8x9xf32>, vector<9x256xf32>, vector<8x256xf32> -> vector<8x256xf32>
    %287 = vector.broadcast %280 : vector<8x1xf32> to vector<8x256xf32>
    %288 = arith.addf %286, %287 : vector<8x256xf32>
    %cst_140 = arith.constant 0.000000e+00 : f32
    %289 = vector.broadcast %cst_140 : f32 to vector<8x256xf32>
    %290 = arith.maximumf %288, %289 : vector<8x256xf32>
    %c0_141 = arith.constant 0 : index
    %c0_142 = arith.constant 0 : index
    %291 = vector.load %arg19[%c0_141, %c0_142] : memref<16x40xf32, #tpu.memory_space<vmem>>, vector<16x40xf32>
    %c0_143 = arith.constant 0 : index
    %c0_144 = arith.constant 0 : index
    %292 = vector.load %arg20[%c0_143, %c0_144] : memref<16x1xf32, #tpu.memory_space<vmem>>, vector<16x1xf32>
    %c6_i32 = arith.constant 6 : i32
    %293 = tpu.dynamic_rotate %290 by %c6_i32 dim 1 : vector<8x256xf32>, i32 -> vector<8x256xf32>
    %294 = tpu.iota {dimensions = array<i32: 1>} : vector<8x128xi32>
    %c-6_i32 = arith.constant -6 : i32
    %295 = vector.broadcast %c-6_i32 : i32 to vector<8x128xi32>
    %296 = arith.addi %294, %295 : vector<8x128xi32>
    %c0_i32_145 = arith.constant 0 : i32
    %297 = vector.broadcast %c0_i32_145 : i32 to vector<8x128xi32>
    %298 = arith.cmpi sge, %296, %297 : vector<8x128xi32>
    %c-6_i32_146 = arith.constant -6 : i32
    %299 = vector.broadcast %c-6_i32_146 : i32 to vector<8x128xi32>
    %300 = arith.addi %294, %299 : vector<8x128xi32>
    %c128_i32_147 = arith.constant 128 : i32
    %301 = vector.broadcast %c128_i32_147 : i32 to vector<8x128xi32>
    %302 = arith.cmpi slt, %300, %301 : vector<8x128xi32>
    %303 = arith.andi %298, %302 : vector<8x128xi1>
    %304 = arith.extui %303 : vector<8x128xi1> to vector<8x128xi32>
    %305 = arith.sitofp %304 : vector<8x128xi32> to vector<8x128xf32>
    %306 = tpu.concatenate %305, %305 in 1 : vector<8x128xf32>, vector<8x128xf32> -> vector<8x256xf32>
    %307 = arith.mulf %293, %306 : vector<8x256xf32>
    %c3_i32 = arith.constant 3 : i32
    %308 = tpu.dynamic_rotate %290 by %c3_i32 dim 1 : vector<8x256xf32>, i32 -> vector<8x256xf32>
    %309 = tpu.iota {dimensions = array<i32: 1>} : vector<8x128xi32>
    %c-3_i32 = arith.constant -3 : i32
    %310 = vector.broadcast %c-3_i32 : i32 to vector<8x128xi32>
    %311 = arith.addi %309, %310 : vector<8x128xi32>
    %c0_i32_148 = arith.constant 0 : i32
    %312 = vector.broadcast %c0_i32_148 : i32 to vector<8x128xi32>
    %313 = arith.cmpi sge, %311, %312 : vector<8x128xi32>
    %c-3_i32_149 = arith.constant -3 : i32
    %314 = vector.broadcast %c-3_i32_149 : i32 to vector<8x128xi32>
    %315 = arith.addi %309, %314 : vector<8x128xi32>
    %c128_i32_150 = arith.constant 128 : i32
    %316 = vector.broadcast %c128_i32_150 : i32 to vector<8x128xi32>
    %317 = arith.cmpi slt, %315, %316 : vector<8x128xi32>
    %318 = arith.andi %313, %317 : vector<8x128xi1>
    %319 = arith.extui %318 : vector<8x128xi1> to vector<8x128xi32>
    %320 = arith.sitofp %319 : vector<8x128xi32> to vector<8x128xf32>
    %321 = tpu.concatenate %320, %320 in 1 : vector<8x128xf32>, vector<8x128xf32> -> vector<8x256xf32>
    %322 = arith.mulf %308, %321 : vector<8x256xf32>
    %c253_i32 = arith.constant 253 : i32
    %323 = tpu.dynamic_rotate %290 by %c253_i32 dim 1 : vector<8x256xf32>, i32 -> vector<8x256xf32>
    %324 = tpu.iota {dimensions = array<i32: 1>} : vector<8x128xi32>
    %c3_i32_151 = arith.constant 3 : i32
    %325 = vector.broadcast %c3_i32_151 : i32 to vector<8x128xi32>
    %326 = arith.addi %324, %325 : vector<8x128xi32>
    %c0_i32_152 = arith.constant 0 : i32
    %327 = vector.broadcast %c0_i32_152 : i32 to vector<8x128xi32>
    %328 = arith.cmpi sge, %326, %327 : vector<8x128xi32>
    %c3_i32_153 = arith.constant 3 : i32
    %329 = vector.broadcast %c3_i32_153 : i32 to vector<8x128xi32>
    %330 = arith.addi %324, %329 : vector<8x128xi32>
    %c128_i32_154 = arith.constant 128 : i32
    %331 = vector.broadcast %c128_i32_154 : i32 to vector<8x128xi32>
    %332 = arith.cmpi slt, %330, %331 : vector<8x128xi32>
    %333 = arith.andi %328, %332 : vector<8x128xi1>
    %334 = arith.extui %333 : vector<8x128xi1> to vector<8x128xi32>
    %335 = arith.sitofp %334 : vector<8x128xi32> to vector<8x128xf32>
    %336 = tpu.concatenate %335, %335 in 1 : vector<8x128xf32>, vector<8x128xf32> -> vector<8x256xf32>
    %337 = arith.mulf %323, %336 : vector<8x256xf32>
    %c250_i32 = arith.constant 250 : i32
    %338 = tpu.dynamic_rotate %290 by %c250_i32 dim 1 : vector<8x256xf32>, i32 -> vector<8x256xf32>
    %339 = tpu.iota {dimensions = array<i32: 1>} : vector<8x128xi32>
    %c6_i32_155 = arith.constant 6 : i32
    %340 = vector.broadcast %c6_i32_155 : i32 to vector<8x128xi32>
    %341 = arith.addi %339, %340 : vector<8x128xi32>
    %c0_i32_156 = arith.constant 0 : i32
    %342 = vector.broadcast %c0_i32_156 : i32 to vector<8x128xi32>
    %343 = arith.cmpi sge, %341, %342 : vector<8x128xi32>
    %c6_i32_157 = arith.constant 6 : i32
    %344 = vector.broadcast %c6_i32_157 : i32 to vector<8x128xi32>
    %345 = arith.addi %339, %344 : vector<8x128xi32>
    %c128_i32_158 = arith.constant 128 : i32
    %346 = vector.broadcast %c128_i32_158 : i32 to vector<8x128xi32>
    %347 = arith.cmpi slt, %345, %346 : vector<8x128xi32>
    %348 = arith.andi %343, %347 : vector<8x128xi1>
    %349 = arith.extui %348 : vector<8x128xi1> to vector<8x128xi32>
    %350 = arith.sitofp %349 : vector<8x128xi32> to vector<8x128xf32>
    %351 = tpu.concatenate %350, %350 in 1 : vector<8x128xf32>, vector<8x128xf32> -> vector<8x256xf32>
    %352 = arith.mulf %338, %351 : vector<8x256xf32>
    %353 = tpu.concatenate %307, %322, %290, %337, %352 in 0 : vector<8x256xf32>, vector<8x256xf32>, vector<8x256xf32>, vector<8x256xf32>, vector<8x256xf32> -> vector<40x256xf32>
    %cst_159 = arith.constant dense<0.000000e+00> : vector<16x256xf32>
    %354 = tpu.matmul %291, %353, %cst_159 {dimension_numbers = #tpu.dot_dimension_numbers<[1], [0], [0], [1], [0, 0, 1, 1], [], []>} : vector<16x40xf32>, vector<40x256xf32>, vector<16x256xf32> -> vector<16x256xf32>
    %355 = vector.broadcast %292 : vector<16x1xf32> to vector<16x256xf32>
    %356 = arith.addf %354, %355 : vector<16x256xf32>
    %cst_160 = arith.constant 0.000000e+00 : f32
    %357 = vector.broadcast %cst_160 : f32 to vector<16x256xf32>
    %358 = arith.maximumf %356, %357 : vector<16x256xf32>
    %c0_161 = arith.constant 0 : index
    %c0_162 = arith.constant 0 : index
    %359 = vector.load %arg21[%c0_161, %c0_162] : memref<8x80xf32, #tpu.memory_space<vmem>>, vector<8x80xf32>
    %c0_163 = arith.constant 0 : index
    %c0_164 = arith.constant 0 : index
    %360 = vector.load %arg22[%c0_163, %c0_164] : memref<8x1xf32, #tpu.memory_space<vmem>>, vector<8x1xf32>
    %c6_i32_165 = arith.constant 6 : i32
    %361 = tpu.dynamic_rotate %358 by %c6_i32_165 dim 1 : vector<16x256xf32>, i32 -> vector<16x256xf32>
    %362 = tpu.iota {dimensions = array<i32: 1>} : vector<16x128xi32>
    %c-6_i32_166 = arith.constant -6 : i32
    %363 = vector.broadcast %c-6_i32_166 : i32 to vector<16x128xi32>
    %364 = arith.addi %362, %363 : vector<16x128xi32>
    %c0_i32_167 = arith.constant 0 : i32
    %365 = vector.broadcast %c0_i32_167 : i32 to vector<16x128xi32>
    %366 = arith.cmpi sge, %364, %365 : vector<16x128xi32>
    %c-6_i32_168 = arith.constant -6 : i32
    %367 = vector.broadcast %c-6_i32_168 : i32 to vector<16x128xi32>
    %368 = arith.addi %362, %367 : vector<16x128xi32>
    %c128_i32_169 = arith.constant 128 : i32
    %369 = vector.broadcast %c128_i32_169 : i32 to vector<16x128xi32>
    %370 = arith.cmpi slt, %368, %369 : vector<16x128xi32>
    %371 = arith.andi %366, %370 : vector<16x128xi1>
    %372 = arith.extui %371 : vector<16x128xi1> to vector<16x128xi32>
    %373 = arith.sitofp %372 : vector<16x128xi32> to vector<16x128xf32>
    %374 = tpu.concatenate %373, %373 in 1 : vector<16x128xf32>, vector<16x128xf32> -> vector<16x256xf32>
    %375 = arith.mulf %361, %374 : vector<16x256xf32>
    %c3_i32_170 = arith.constant 3 : i32
    %376 = tpu.dynamic_rotate %358 by %c3_i32_170 dim 1 : vector<16x256xf32>, i32 -> vector<16x256xf32>
    %377 = tpu.iota {dimensions = array<i32: 1>} : vector<16x128xi32>
    %c-3_i32_171 = arith.constant -3 : i32
    %378 = vector.broadcast %c-3_i32_171 : i32 to vector<16x128xi32>
    %379 = arith.addi %377, %378 : vector<16x128xi32>
    %c0_i32_172 = arith.constant 0 : i32
    %380 = vector.broadcast %c0_i32_172 : i32 to vector<16x128xi32>
    %381 = arith.cmpi sge, %379, %380 : vector<16x128xi32>
    %c-3_i32_173 = arith.constant -3 : i32
    %382 = vector.broadcast %c-3_i32_173 : i32 to vector<16x128xi32>
    %383 = arith.addi %377, %382 : vector<16x128xi32>
    %c128_i32_174 = arith.constant 128 : i32
    %384 = vector.broadcast %c128_i32_174 : i32 to vector<16x128xi32>
    %385 = arith.cmpi slt, %383, %384 : vector<16x128xi32>
    %386 = arith.andi %381, %385 : vector<16x128xi1>
    %387 = arith.extui %386 : vector<16x128xi1> to vector<16x128xi32>
    %388 = arith.sitofp %387 : vector<16x128xi32> to vector<16x128xf32>
    %389 = tpu.concatenate %388, %388 in 1 : vector<16x128xf32>, vector<16x128xf32> -> vector<16x256xf32>
    %390 = arith.mulf %376, %389 : vector<16x256xf32>
    %c253_i32_175 = arith.constant 253 : i32
    %391 = tpu.dynamic_rotate %358 by %c253_i32_175 dim 1 : vector<16x256xf32>, i32 -> vector<16x256xf32>
    %392 = tpu.iota {dimensions = array<i32: 1>} : vector<16x128xi32>
    %c3_i32_176 = arith.constant 3 : i32
    %393 = vector.broadcast %c3_i32_176 : i32 to vector<16x128xi32>
    %394 = arith.addi %392, %393 : vector<16x128xi32>
    %c0_i32_177 = arith.constant 0 : i32
    %395 = vector.broadcast %c0_i32_177 : i32 to vector<16x128xi32>
    %396 = arith.cmpi sge, %394, %395 : vector<16x128xi32>
    %c3_i32_178 = arith.constant 3 : i32
    %397 = vector.broadcast %c3_i32_178 : i32 to vector<16x128xi32>
    %398 = arith.addi %392, %397 : vector<16x128xi32>
    %c128_i32_179 = arith.constant 128 : i32
    %399 = vector.broadcast %c128_i32_179 : i32 to vector<16x128xi32>
    %400 = arith.cmpi slt, %398, %399 : vector<16x128xi32>
    %401 = arith.andi %396, %400 : vector<16x128xi1>
    %402 = arith.extui %401 : vector<16x128xi1> to vector<16x128xi32>
    %403 = arith.sitofp %402 : vector<16x128xi32> to vector<16x128xf32>
    %404 = tpu.concatenate %403, %403 in 1 : vector<16x128xf32>, vector<16x128xf32> -> vector<16x256xf32>
    %405 = arith.mulf %391, %404 : vector<16x256xf32>
    %c250_i32_180 = arith.constant 250 : i32
    %406 = tpu.dynamic_rotate %358 by %c250_i32_180 dim 1 : vector<16x256xf32>, i32 -> vector<16x256xf32>
    %407 = tpu.iota {dimensions = array<i32: 1>} : vector<16x128xi32>
    %c6_i32_181 = arith.constant 6 : i32
    %408 = vector.broadcast %c6_i32_181 : i32 to vector<16x128xi32>
    %409 = arith.addi %407, %408 : vector<16x128xi32>
    %c0_i32_182 = arith.constant 0 : i32
    %410 = vector.broadcast %c0_i32_182 : i32 to vector<16x128xi32>
    %411 = arith.cmpi sge, %409, %410 : vector<16x128xi32>
    %c6_i32_183 = arith.constant 6 : i32
    %412 = vector.broadcast %c6_i32_183 : i32 to vector<16x128xi32>
    %413 = arith.addi %407, %412 : vector<16x128xi32>
    %c128_i32_184 = arith.constant 128 : i32
    %414 = vector.broadcast %c128_i32_184 : i32 to vector<16x128xi32>
    %415 = arith.cmpi slt, %413, %414 : vector<16x128xi32>
    %416 = arith.andi %411, %415 : vector<16x128xi1>
    %417 = arith.extui %416 : vector<16x128xi1> to vector<16x128xi32>
    %418 = arith.sitofp %417 : vector<16x128xi32> to vector<16x128xf32>
    %419 = tpu.concatenate %418, %418 in 1 : vector<16x128xf32>, vector<16x128xf32> -> vector<16x256xf32>
    %420 = arith.mulf %406, %419 : vector<16x256xf32>
    %421 = tpu.concatenate %375, %390, %358, %405, %420 in 0 : vector<16x256xf32>, vector<16x256xf32>, vector<16x256xf32>, vector<16x256xf32>, vector<16x256xf32> -> vector<80x256xf32>
    %cst_185 = arith.constant dense<0.000000e+00> : vector<8x256xf32>
    %422 = tpu.matmul %359, %421, %cst_185 {dimension_numbers = #tpu.dot_dimension_numbers<[1], [0], [0], [1], [0, 0, 1, 1], [], []>} : vector<8x80xf32>, vector<80x256xf32>, vector<8x256xf32> -> vector<8x256xf32>
    %423 = vector.broadcast %360 : vector<8x1xf32> to vector<8x256xf32>
    %424 = arith.addf %422, %423 : vector<8x256xf32>
    %cst_186 = arith.constant 0.000000e+00 : f32
    %425 = vector.broadcast %cst_186 : f32 to vector<8x256xf32>
    %426 = arith.maximumf %424, %425 : vector<8x256xf32>
    %c0_187 = arith.constant 0 : index
    %c0_188 = arith.constant 0 : index
    %427 = vector.load %arg23[%c0_187, %c0_188] : memref<3x24xf32, #tpu.memory_space<vmem>>, vector<3x24xf32>
    %c0_189 = arith.constant 0 : index
    %c0_190 = arith.constant 0 : index
    %428 = vector.load %arg24[%c0_189, %c0_190] : memref<3x1xf32, #tpu.memory_space<vmem>>, vector<3x1xf32>
    %c2_i32_191 = arith.constant 2 : i32
    %429 = tpu.dynamic_rotate %426 by %c2_i32_191 dim 1 : vector<8x256xf32>, i32 -> vector<8x256xf32>
    %430 = arith.mulf %429, %147 : vector<8x256xf32>
    %c254_i32_192 = arith.constant 254 : i32
    %431 = tpu.dynamic_rotate %426 by %c254_i32_192 dim 1 : vector<8x256xf32>, i32 -> vector<8x256xf32>
    %432 = arith.mulf %431, %192 : vector<8x256xf32>
    %433 = tpu.concatenate %430, %426, %432 in 0 : vector<8x256xf32>, vector<8x256xf32>, vector<8x256xf32> -> vector<24x256xf32>
    %cst_193 = arith.constant dense<0.000000e+00> : vector<3x256xf32>
    %434 = tpu.matmul %427, %433, %cst_193 {dimension_numbers = #tpu.dot_dimension_numbers<[1], [0], [0], [1], [0, 0, 1, 1], [], []>} : vector<3x24xf32>, vector<24x256xf32>, vector<3x256xf32> -> vector<3x256xf32>
    %435 = vector.broadcast %428 : vector<3x1xf32> to vector<3x256xf32>
    %436 = arith.addf %434, %435 : vector<3x256xf32>
    %437 = arith.addf %278, %436 : vector<3x256xf32>
    %c0_194 = arith.constant 0 : index
    %c0_195 = arith.constant 0 : index
    %438 = vector.load %arg25[%c0_194, %c0_195] : memref<3x256xf32, #tpu.memory_space<vmem>>, vector<3x256xf32>
    tpu.vector_store %arg25[%c0_194, %c0_195], %437 {strides = array<i32>} : memref<3x256xf32, #tpu.memory_space<vmem>>, vector<3x256xf32>,
    return
  }
}

</mosaic_0001>

<bundles_post_ra>
// kernel: tpu_custom_call.1
= control target key start
LH: loop header
LB: loop body
LE: loop exit
PB: predicated region body
PF: predicated region fallthrough
CT: control target
= control target key end

     0   :  { %s2277_s0 = inlined_call_operand.hbm [shape: f32[2,6], index: 0, kind: input, shape index: {}]   ;;  %s2278_s1 = inlined_call_operand.vmem [shape: f32[6,3,128], index: 1, kind: input, shape index: {}]   ;;  %s2279_s2 = inlined_call_operand.vmem [shape: f32[3,128], index: 2, kind: input, shape index: {}]   ;;  %s2280_s3 = inlined_call_operand.vmem [shape: f32[8,15], index: 3, kind: input, shape index: {}]   ;;  %s2281_s4 = inlined_call_operand.vmem [shape: f32[8,1], index: 4, kind: input, shape index: {}]   ;;  %s2282_s5 = inlined_call_operand.vmem [shape: f32[3,40], index: 5, kind: input, shape index: {}]   ;;  %s2283_s6 = inlined_call_operand.vmem [shape: f32[3,1], index: 6, kind: input, shape index: {}]   ;;  %s2284_s7 = inlined_call_operand.hbm [shape: f32[3,128,128], index: 7, kind: input, shape index: {}]   ;;  %s2285_s8 = inlined_call_operand.vmem [shape: f32[1,128], index: 8, kind: input, shape index: {}]   ;;  %s2286_s9 = inlined_call_operand.hbm [shape: f32[128,128], index: 9, kind: input, shape index: {}]   ;;  %s2287_s10 = inlined_call_operand.hbm [shape: f32[1,128], index: 10, kind: input, shape index: {}]   ;;  %s2288_s11 = inlined_call_operand.hbm [shape: f32[3,128,128], index: 11, kind: input, shape index: {}]   ;;  %s2289_s12 = inlined_call_operand.vmem [shape: f32[3,256], index: 12, kind: input, shape index: {}]   ;;  %s2290_s13 = inlined_call_operand.hbm [shape: f32[8,9], index: 13, kind: input, shape index: {}]   ;;  %s2291_s14 = inlined_call_operand.vmem [shape: f32[8,1], index: 14, kind: input, shape index: {}]   ;;  %s2292_s15 = inlined_call_operand.vmem [shape: f32[3,24], index: 15, kind: input, shape index: {}]   ;;  %s2293_s16 = inlined_call_operand.vmem [shape: f32[3,1], index: 16, kind: input, shape index: {}]   ;;  %s2294_s17 = inlined_call_operand.hbm [shape: f32[8,9], index: 17, kind: input, shape index: {}]   ;;  %s2295_s18 = inlined_call_operand.vmem [shape: f32[8,1], index: 18, kind: input, shape index: {}]   ;;  %s2296_s19 = inlined_call_operand.vmem [shape: f32[16,40], index: 19, kind: input, shape index: {}]   ;;  %s2297_s20 = inlined_call_operand.vmem [shape: f32[16,1], index: 20, kind: input, shape index: {}]   ;;  %s2298_s21 = inlined_call_operand.vmem [shape: f32[8,80], index: 21, kind: input, shape index: {}]   ;;  %s2299_s22 = inlined_call_operand.vmem [shape: f32[8,1], index: 22, kind: input, shape index: {}]   ;;  %s2300_s23 = inlined_call_operand.vmem [shape: f32[3,24], index: 23, kind: input, shape index: {}]   ;;  %s2301_s24 = inlined_call_operand.vmem [shape: f32[3,1], index: 24, kind: input, shape index: {}]   ;;  %s2302_s25 = inlined_call_operand.hbm [shape: f32[3,256], index: 25, kind: output, shape index: {}]  }
   0x1   :  { %2304 = sst [smem:[#allocation22_spill]] %s2277_s0 }
   0x2   :  { %2305 = sst [smem:[#allocation23_spill]] %s2278_s1 }
   0x3   :  { %2306 = sst [smem:[#allocation24_spill]] %s2279_s2 }
   0x4   :  { %2307 = sst [smem:[#allocation25_spill]] %s2280_s3 }
   0x5   :  { %2308 = sst [smem:[#allocation26_spill]] %s2281_s4 }
   0x6   :  { %2309 = sst [smem:[#allocation27_spill]] %s2282_s5 }
   0x7   :  { %2310 = sst [smem:[#allocation28_spill]] %s2283_s6 }
   0x8   :  { %2311 = sst [smem:[#allocation29_spill]] %s2284_s7 }
   0x9   :  { %2312 = sst [smem:[#allocation30_spill]] %s2285_s8 }
   0xa   :  { %2313 = sst [smem:[#allocation31_spill]] %s2286_s9 }
   0xb   :  { %2314 = sst [smem:[#allocation32_spill]] %s2300_s23 }
   0xc   :  { %2315 = sst [smem:[#allocation33_spill]] %s2301_s24 }
   0xd   :  { %2316 = sst [smem:[#allocation34_spill]] %s2302_s25 }
   0xe   :  { %30 = vsyncpa [#allocation5], 0 }
   0xf   :  { %31 = vsyncpa [#allocation3], 0 }
  0x10   :  { %32 = vsyncpa [#allocation8], 0 }
  0x11   :  { %33 = vsyncpa [#allocation11], 0 }
  0x12   :  { %34 = vsyncpa [#allocation14], 0 }
  0x13   :  { %35 = vsyncpa [#allocation4], 0  ;;  %s2317_s6 = sld [smem:[#allocation31_spill]]  ;;  %s1654_s7 = smov [#allocation7]  }
  0x14   :  { %s78_s3 = sshll.u32 %s1654_s7, 4  ;;  %s100_s8 = sshll.u32 %s2288_s11, 4  ;;  %s79_s3 = int_to_ptr.vmem [resolvable:$true] %s78_s3  ;;  %s101_s8 = int_to_ptr.hbm [resolvable:$true] %s100_s8 }
  0x15   :  { %s1655_s27 = smov 128   ;;  %s1656_s4 = smov 8  }
  0x16   :  { %s1657_s28 = smov [#allocation10]   ;;  %s2318_s25 = sld [smem:[#allocation22_spill]] }
  0x17   :  { %s102_s9 = sshll.u32 %s1657_s28, 4  ;;  %s1658_s24 = smov [#allocation2]   ;;  %s103_s9 = int_to_ptr.vmem [resolvable:$true] %s102_s9 }
  0x18   :  { %108 = dma.hbm_to_vmem [thread:$0]  %s101_s8, 6144, %s103_s9, [#allocation11], %s1655_s27, %s1655_s27, %s1656_s4  }
  0x19   :  { %s76_s30 = sshll.u32 %s2317_s6, 4  ;;  %s2319_s6 = sld [smem:[#allocation29_spill]]  ;;  %s77_s30 = int_to_ptr.hbm [resolvable:$true] %s76_s30 }
  0x1a   :  { %84 = dma.hbm_to_vmem [thread:$0]  %s77_s30, 2048, %s79_s3, [#allocation8], %s1655_s27, %s1655_s27, %s1656_s4  }
  0x1b   :  { %s1659_s11 = smov [#allocation6]   ;;  %s90_s1 = sshll.u32 %s2287_s10, 4  ;;  %s91_s1 = int_to_ptr.hbm [resolvable:$true] %s90_s1 }
  0x1c   :  { %s41_s23 = sshll.u32 %s2318_s25, 4  ;;  %s63_s26 = sshll.u32 %s1659_s11, 4  ;;  %s42_s23 = int_to_ptr.hbm [resolvable:$true] %s41_s23  ;;  %s64_s26 = int_to_ptr.vmem [resolvable:$true] %s63_s26 }
  0x1d   :  { %44 = dma.hbm_to_smem %s42_s23, 32, %s1658_s24, [#allocation5]  }
  0x1e   :  { %s116_s8 = sshll.u32 %s2290_s13, 4  ;;  %s1660_s9 = smov [#allocation9]   ;;  %s117_s8 = int_to_ptr.hbm [resolvable:$true] %s116_s8 }
  0x1f   :  { %s61_s7 = sshll.u32 %s2319_s6, 4  ;;  %s92_s5 = sshll.u32 %s1660_s9, 4  ;;  %s62_s7 = int_to_ptr.hbm [resolvable:$true] %s61_s7  ;;  %s93_s5 = int_to_ptr.vmem [resolvable:$true] %s92_s5 }
  0x20   :  { %69 = dma.hbm_to_vmem [thread:$0]  %s62_s7, 6144, %s64_s26, [#allocation3], %s1655_s27, %s1655_s27, %s1656_s4  }
  0x21   :  { %95 = dma.hbm_to_vmem [thread:$0]  %s91_s1, 16, %s93_s5, [#allocation8]  }
  0x22   :  { %s1661_s23 = smov [#allocation12]   ;;  %s133_s2 = sshll.u32 %s2294_s17, 4  ;;  %s134_s2 = int_to_ptr.hbm [resolvable:$true] %s133_s2 }
  0x23   :  { %s118_s24 = sshll.u32 %s1661_s23, 4  ;;  %s1662_s10 = smov [#allocation13]   ;;  %s119_s24 = int_to_ptr.vmem [resolvable:$true] %s118_s24 }
  0x24   :  { %121 = dma.hbm_to_vmem [thread:$0]  %s117_s8, 128, %s119_s24, [#allocation11]  }
  0x25   :  { %s135_s27 = sshll.u32 %s1662_s10, 4  ;;  %s136_s27 = int_to_ptr.vmem [resolvable:$true] %s135_s27 }
  0x26   :  { %138 = dma.hbm_to_vmem [thread:$0]  %s134_s2, 128, %s136_s27, [#allocation14]  }
  0x27   :  { %1642 = dma.done.wait [#allocation5], 32  }
  0x28   :  { %1643 = vsyncadd [#allocation5], 4294967264 }
  0x29   :  { %1644 = dma.done.wait [#allocation3], 6144  }
  0x2a   :  { %1645 = vsyncadd [#allocation3], 4294961152 }
  0x2b   :  { %1646 = dma.done.wait [#allocation8], 2064  }
  0x2c   :  { %1647 = vsyncadd [#allocation8], 4294965232 }
  0x2d   :  { %1648 = dma.done.wait [#allocation11], 6272  }
  0x2e   :  { %1649 = vsyncadd [#allocation11], 4294961024 }
  0x2f   :  { %1650 = dma.done.wait [#allocation14], 128  }
  0x30   :  { %1651 = vsyncadd [#allocation14], 4294967168 }
  0x31   :  { %181 = sfence }
  0x32   :  { %s194_s13 = sld [smem:[#allocation2]]  ;;  %v1667_v46 = vmov 0   ;;  %v250_v47 = vlaneseq  ;;  %v1668_v56 = vmov 0.0   ;;  %vm338_vm6 = vcmask 1040384  }
  0x33   :  { %s1392_s17 = sld [smem:[#allocation2 + $0x1]]  ;;  %1457 = vset.pattern.permute.xlu2 %v1667_v46  ;;  %1458 = vset.pattern.permute.xlu1 %v1667_v46  ;;  %vm341_vm7 = vcmask 1043456   ;;  %vm353_vm9 = vcmask 1046528   ;;  %vm332_vm11 = vcmask 1042432   ;;  %vm335_vm12 = vcmask 1045504  }
  0x34   :  { %s1393_s4 = sld [smem:[#allocation2 + $0x2]]  ;;  %1459 = vset.pattern.permute.xlu0 %v1667_v46  ;;  %v1869_v49 = vand.u32 127, %v250_v47  ;;  %vm349_vm13 = vcmask 121856   ;;  %v508_v46 = vld [vmem:[#allocation6 + $0x78] sm:$0xff]  ;;  %v528_v47 = vld [vmem:[#allocation6 + $0xf0] sm:$0xff]  ;;  %vm441_vm14 = vcmask 326656  }
  0x35   :  { %s1394_s6 = sld [smem:[#allocation2 + $0x3]]  ;;  %vm787_vm15 = vcmask 1041408  }
  0x36   :  { %s2320_s26 = sld [smem:[#allocation23_spill]]  ;;  %v300_v52 = vadd.s32 2, %v1869_v49  ;;  %v285_v53 = vadd.s32 1, %v1869_v49  ;;  %v270_v54 = vadd.s32 4294967295, %v1869_v49  ;;  %vm297_vm3 = vcmp.lt.s32.totalorder %v1869_v49, 126 }
  0x37   :  { %s1395_s30 = sld [smem:[#allocation2 + $0x4]]  ;;  %vm282_vm4 = vcmp.lt.s32.totalorder %v1869_v49, 127  ;;  %vm267_vm5 = vcmp.lt.s32.totalorder %v1869_v49, 1  ;;  %v255_v59 = vadd.s32 4294967294, %v1869_v49  ;;  %vm252_vm10 = vcmp.lt.s32.totalorder %v1869_v49, 2 }
  0x38   :  { %s1396_s25 = sld [smem:[#allocation2 + $0x5]]  ;;  %v195_v4 = vstv %s194_s13  ;;  %vm302_vm0 = vcmp.lt.s32.totalorder %v300_v52, 128  ;;  %vm287_vm1 = vcmp.lt.s32.totalorder %v285_v53, 128  ;;  %vm271_vm2 = vcmp.ge.s32.totalorder %v270_v54, 0  ;;  %v526_v52 = vld [vmem:[#allocation6 + $0xe0] sm:$0xff]  ;;  %v525_v54 = vld [vmem:[#allocation6 + $0xd8] sm:$0xff] }
  0x39   :  { %s2321_s23 = sld [smem:[#allocation24_spill]]  ;;  %v199_v6 = vstv %s1392_s17  ;;  %v1878_v57 = vsel %vm302_vm0, 1.0, %v1668_v56  ;;  %v1881_v58 = vsel %vm287_vm1, 1.0, %v1668_v56  ;;  %v1885_v60 = vsel %vm271_vm2, 1.0, %v1668_v56  ;;  %v505_v53 = vld [vmem:[#allocation6 + $0x60] sm:$0xff]  ;;  %s1673_s17 = smov [#allocation15]  }
  0x3a   :  { %s1397_s24 = sld [smem:[#allocation2 + $0x80]]  ;;  %v203_v9 = vstv %s1393_s4  ;;  %s1663_s4 = smov 126   ;;  %vm256_vm8 = vcmp.ge.s32.totalorder %v255_v59, 0  ;;  %v524_v59 = vld [vmem:[#allocation6 + $0xd0] sm:$0xff]  ;;  %vm838_vm0 = vcmask 72704   ;;  %vm911_vm1 = vcmask 195584  }
  0x3b   :  { %s1398_s0 = sld [smem:[#allocation2 + $0x81]]  ;;  %v207_v12 = vstv %s1394_s6  ;;  %s1664_s6 = smov 127  }
  0x3c   :  { %v182_v0 = vld [vmem:[%s2320_s26] sm:$0x7]  ;;  %v1387_v1 = vld [vmem:[%s2320_s26 + $0x4] sm:$0x7]  ;;  %v1388_v2 = vld [vmem:[%s2320_s26 + $0x8] sm:$0x7] }
  0x3d   :  { %v196_v5 = vmul.f32 %v195_v4, %v182_v0  ;;  %v1389_v7 = vld [vmem:[%s2320_s26 + $0xc] sm:$0x7]  ;;  %v200_v8 = vmul.f32 %v1387_v1, %v199_v6  ;;  %s1399_s10 = sld [smem:[#allocation2 + $0x82]]  ;;  %v204_v11 = vmul.f32 %v1388_v2, %v203_v9  ;;  %v1390_v13 = vld [vmem:[%s2320_s26 + $0x10] sm:$0x7]  ;;  %v211_v14 = vstv %s1395_s30  ;;  %s1666_s30 = smov 2  }
  0x3e   :  { %s1400_s27 = sld [smem:[#allocation2 + $0x83]]  ;;  %v1391_v15 = vld [vmem:[%s2320_s26 + $0x14] sm:$0x7]  ;;  %v208_v17 = vmul.f32 %v1389_v7, %v207_v12  ;;  %v215_v18 = vstv %s1396_s25  ;;  %v212_v21 = vmul.f32 %v1390_v13, %v211_v14  ;;  %s1665_s26 = smov 1  }
  0x3f   :  { %v193_v3 = vld [vmem:[%s2321_s23] sm:$0x7]  ;;  %s1401_s13 = sld [smem:[#allocation2 + $0x84]]  ;;  %v216_v24 = vmul.f32 %v1391_v15, %v215_v18 }
  0x40   :  { %v197_v10 = vadd.f32 %v196_v5, %v193_v3  ;;  %s1402_s1 = sld [smem:[#allocation2 + $0x85]]  ;;  %v219_v19 = vstv %s1397_s24 }
  0x41   :  { %v220_v22 = vmul.f32 %v219_v19, %v182_v0  ;;  %v223_v23 = vstv %s1398_s0  ;;  %s2322_s8 = sld [smem:[#allocation26_spill]] }
  0x42   :  { %v201_v16 = vadd.f32 %v200_v8, %v197_v10  ;;  %v224_v25 = vmul.f32 %v1387_v1, %v223_v23  ;;  %s2323_s23 = sld [smem:[#allocation25_spill]] }
  0x43   :  { %v227_v26 = vstv %s1399_s10  ;;  %v221_v28 = vadd.f32 %v220_v22, %v193_v3  ;;  %s2324_s29 = sld [smem:[#allocation28_spill]] }
  0x44   :  { %v205_v20 = vadd.f32 %v204_v11, %v201_v16  ;;  %v228_v29 = vmul.f32 %v1388_v2, %v227_v26  ;;  %v231_v30 = vstv %s1400_s27  ;;  %s2325_s27 = sld [smem:[#allocation27_spill]] }
  0x45   :  { %v235_v31 = vstv %s1401_s13  ;;  %v225_v33 = vadd.f32 %v224_v25, %v221_v28  ;;  %v232_v34 = vmul.f32 %v1389_v7, %v231_v30  ;;  %s2326_s13 = sld [smem:[#allocation30_spill]] }
  0x46   :  { %v209_v27 = vadd.f32 %v208_v17, %v205_v20  ;;  %v239_v35 = vstv %s1402_s1  ;;  %v236_v38 = vmul.f32 %v1390_v13, %v235_v31  ;;  %v1912_v20 = vsel %vm256_vm8, 1.0, %v1668_v56  ;;  %s2328_s3 = sld [smem:[#allocation32_spill]] }
  0x47   :  { %v229_v37 = vadd.f32 %v228_v29, %v225_v33  ;;  %v240_v41 = vmul.f32 %v1391_v15, %v239_v35  ;;  %v245_v45 = vld [vmem:[%s2322_s8] sm:$0xff]  ;;  %vm1068_vm8 = vcmp.lt.s32.totalorder %v1869_v49, 3  ;;  %s2329_s25 = sld [smem:[#allocation34_spill]] }
  0x48   :  { %v213_v32 = vadd.f32 %v212_v21, %v209_v27 }
  0x49   :  { %v233_v40 = vadd.f32 %v232_v34, %v229_v37 }
  0x4a   :  { %v217_v36 = vadd.f32 %v216_v24, %v213_v32  ;;  %v244_v32 = vld [vmem:[%s2323_s23] sm:$0xff]  ;;  %s1672_s23 = smov 6  }
  0x4b   :  { %v237_v42 = vadd.f32 %v236_v38, %v233_v40 }
  0x4c   :  { %v1846_v39 = vmax.f32 %v217_v36, 0.0 }
  0x4d   :  { %v241_v43 = vadd.f32 %v240_v41, %v237_v42  ;;  %s1373_s28 = sshll.u32 %s2329_s25, 4  ;;  %s1374_s28 = int_to_ptr.hbm [resolvable:$true] %s1373_s28 }
  0x4e   :  { %293 = vrot.lane.b32.xlu1 %v1846_v39, %s1663_s4  ;;  %278 = vrot.lane.b32.xlu0 %v1846_v39, %s1664_s6  ;;  %v316_v0 = vrot.slane %v1846_v39, 2 }
  0x4f   :  { %263 = vrot.lane.b32.xlu2 %v1846_v39, %s1665_s26  ;;  %v1854_v44 = vmax.f32 %v241_v43, 0.0  ;;  %v403_v43 = vld [vmem:[%s2324_s29] sm:$0x7] }
  0x51   :  { %v317_v63 = vrot.slane %v1854_v44, 2 }
  0x56   :  { %295 = vrot.lane.b32.xlu1 %v1854_v44, %s1663_s4  ;;  %280 = vrot.lane.b32.xlu0 %v1854_v44, %s1664_s6 }
  0x57   :  { %265 = vrot.lane.b32.xlu2 %v1854_v44, %s1665_s26 }
  0x5e   :  { %248 = vrot.lane.b32.xlu1 %v1854_v44, %s1666_s30  ;;  %246 = vrot.lane.b32.xlu0 %v1846_v39, %s1666_s30 }
  0x5f   :  { %346 = vperm.xlu2 %1457, %v245_v45   ;;  %v529_v45 = vld [vmem:[#allocation6 + $0xf8] sm:$0xff] }
  0xa9   :  { %v264_v48 = vpop.permute.xlu2 %263 }
  0xb1   :  { %v266_v55 = vpop.permute.xlu2 %265 }
  0xb2   :  { %v268_v9 = vsel %vm267_vm5, %v264_v48, %v266_v55  ;;  %v269_v10 = vsel %vm267_vm5, %v266_v55, %v264_v48  ;;  %v507_v48 = vld [vmem:[#allocation6 + $0x70] sm:$0xff]  ;;  %v504_v55 = vld [vmem:[#allocation6 + $0x58] sm:$0xff] }
  0xb3   :  { %v276_v15 = vmul.f32 %v1885_v60, %v269_v10  ;;  %v277_v16 = vmul.f32 %v1885_v60, %v268_v9  ;;  %v521_v9 = vld [vmem:[#allocation6 + $0xb8] sm:$0xff] }
  0xb4   :  { %v500_v10 = vld [vmem:[#allocation6 + $0x38] sm:$0xff] }
  0xb5   :  { %v310_v26 = vrot.slane %v276_v15, 5  ;;  %v311_v27 = vrot.slane %v277_v16, 5  ;;  %v519_v15 = vld [vmem:[#allocation6 + $0xa8] sm:$0xff] }
  0xb9   :  { %v347_v35 = vpop.permute.xlu2 %346 }
  0xc0   :  { %v294_v50 = vpop.permute.xlu1 %293  ;;  %v279_v51 = vpop.permute.xlu0 %278 }
  0xc8   :  { %v296_v61 = vpop.permute.xlu1 %295  ;;  %v281_v62 = vpop.permute.xlu0 %280 }
  0xc9   :  { %v298_v1 = vsel %vm297_vm3, %v294_v50, %v296_v61  ;;  %v299_v2 = vsel %vm297_vm3, %v296_v61, %v294_v50  ;;  %v283_v3 = vsel %vm282_vm4, %v279_v51, %v281_v62  ;;  %v284_v4 = vsel %vm282_vm4, %v281_v62, %v279_v51  ;;  %v527_v50 = vld [vmem:[#allocation6 + $0xe8] sm:$0xff]  ;;  %v503_v61 = vld [vmem:[#allocation6 + $0x50] sm:$0xff] }
  0xca   :  { %v306_v5 = vmul.f32 %v1878_v57, %v298_v1  ;;  %v307_v6 = vmul.f32 %v1878_v57, %v299_v2  ;;  %v291_v7 = vmul.f32 %v1881_v58, %v283_v3  ;;  %v292_v8 = vmul.f32 %v1881_v58, %v284_v4  ;;  %v506_v51 = vld [vmem:[#allocation6 + $0x68] sm:$0xff] }
  0xcb   :  { %v523_v1 = vld [vmem:[#allocation6 + $0xc8] sm:$0xff] }
  0xcc   :  { %v328_v11 = vrot.slane %v306_v5, 4  ;;  %v329_v12 = vrot.slane %v307_v6, 4  ;;  %v322_v13 = vrot.slane %v291_v7, 7  ;;  %v323_v14 = vrot.slane %v292_v8, 7  ;;  %v502_v2 = vld [vmem:[#allocation6 + $0x48] sm:$0xff]  ;;  %v522_v7 = vld [vmem:[#allocation6 + $0xc0] sm:$0xff] }
  0xcd   :  { %v501_v8 = vld [vmem:[#allocation6 + $0x40] sm:$0xff] }
  0xce   :  { %v340_v17 = vsel %vm338_vm6, %v317_v63, %v323_v14  ;;  %v339_v18 = vsel %vm338_vm6, %v316_v0, %v322_v13  ;;  %v499_v13 = vld [vmem:[#allocation6 + $0x30] sm:$0xff] }
  0xcf   :  { %v343_v19 = vsel %vm341_vm7, %v340_v17, %v329_v12  ;;  %v342_v21 = vsel %vm341_vm7, %v339_v18, %v328_v11  ;;  %v520_v11 = vld [vmem:[#allocation6 + $0xb0] sm:$0xff] }
  0xd0   :  { %v249_v22 = vpop.permute.xlu1 %248  ;;  %1409 = vmatpush.msk.msra.mxu1 %vm353_vm9, %v343_v19  ;;  %v247_v23 = vpop.permute.xlu0 %246  ;;  %1407 = vmatpush.msk.msra.mxu0 %vm353_vm9, %v342_v21 }
  0xd1   :  { %v253_v24 = vsel %vm252_vm10, %v247_v23, %v249_v22  ;;  %v254_v25 = vsel %vm252_vm10, %v249_v22, %v247_v23  ;;  %v498_v22 = vld [vmem:[#allocation6 + $0x28] sm:$0xff] }
  0xd2   :  { %v261_v28 = vmul.f32 %v1912_v20, %v254_v25  ;;  %v262_v29 = vmul.f32 %v1912_v20, %v253_v24 }
  0xd4   :  { %v333_v30 = vsel %vm332_vm11, %v261_v28, %v310_v26  ;;  %v334_v31 = vsel %vm332_vm11, %v262_v29, %v311_v27 }
  0xd5   :  { %v336_v33 = vsel %vm335_vm12, %v333_v30, %v316_v0  ;;  %v337_v34 = vsel %vm335_vm12, %v334_v31, %v317_v63 }
  0xd6   :  { %375 = vmatpush.msra.mxu0 %v336_v33  ;;  %395 = vmatpush.msra.mxu1 %v337_v34  ;;  %v402_v33 = vld [vmem:[%s2325_s27] sm:$0x7] }
  0xd7   :  { %1408 = vmatmul.msk.f32.vlgmr.msra.gmra.mxu0 %vm349_vm13, %v244_v32  ;;  %1410 = vmatmul.msk.f32.vlgmr.msra.gmra.mxu1 %vm349_vm13, %v244_v32  ;;  %v591_v34 = vld [vmem:[#allocation6 + $0x178] sm:$0xff]  ;;  %vm1246_vm13 = vcmask 654336  }
  0xd8   :  { %530 = vmatpush.msrb.mxu0 %v529_v45  ;;  %550 = vmatpush.msrb.mxu1 %v508_v46  ;;  %v582_v45 = vld [vmem:[#allocation6 + $0x130] sm:$0xff]  ;;  %v581_v46 = vld [vmem:[#allocation6 + $0x128] sm:$0xff] }
  0xda   :  { %531 = vmatpush.msrb.mxu0 %v528_v47  ;;  %551 = vmatpush.msrb.mxu1 %v507_v48  ;;  %v518_v47 = vld [vmem:[#allocation6 + $0xa0] sm:$0xff] }
  0xdb   :  { %v497_v48 = vld [vmem:[#allocation6 + $0x20] sm:$0xff] }
  0xdc   :  { %532 = vmatpush.msrb.mxu0 %v527_v50  ;;  %552 = vmatpush.msrb.mxu1 %v506_v51  ;;  %v580_v50 = vld [vmem:[#allocation6 + $0x120] sm:$0xff]  ;;  %v517_v51 = vld [vmem:[#allocation6 + $0x98] sm:$0xff] }
  0xde   :  { %533 = vmatpush.msrb.mxu0 %v526_v52  ;;  %553 = vmatpush.msrb.mxu1 %v505_v53  ;;  %v496_v52 = vld [vmem:[#allocation6 + $0x18] sm:$0xff] }
  0xdf   :  { %v579_v53 = vld [vmem:[#allocation6 + $0x118] sm:$0xff] }
  0xe0   :  { %534 = vmatpush.msrb.mxu0 %v525_v54  ;;  %554 = vmatpush.msrb.mxu1 %v504_v55  ;;  %v516_v54 = vld [vmem:[#allocation6 + $0x90] sm:$0xff] }
  0xe1   :  { %v495_v55 = vld [vmem:[#allocation6 + $0x10] sm:$0xff] }
  0xe2   :  { %535 = vmatpush.msrb.mxu0 %v524_v59  ;;  %555 = vmatpush.msrb.mxu1 %v503_v61  ;;  %v578_v59 = vld [vmem:[#allocation6 + $0x110] sm:$0xff]  ;;  %v515_v61 = vld [vmem:[#allocation6 + $0x88] sm:$0xff] }
  0xe4   :  { %536 = vmatpush.msrb.mxu0 %v523_v1  ;;  %556 = vmatpush.msrb.mxu1 %v502_v2  ;;  %v493_v1 = vld [vmem:[#allocation6] sm:$0xff] }
  0xe5   :  { %v576_v2 = vld [vmem:[#allocation6 + $0x100] sm:$0xff] }
  0xe6   :  { %537 = vmatpush.msrb.mxu0 %v522_v7  ;;  %557 = vmatpush.msrb.mxu1 %v501_v8  ;;  %v630_v7 = vld [vmem:[#allocation7 + $0x58] sm:$0xff]  ;;  %v629_v8 = vld [vmem:[#allocation7 + $0x50] sm:$0xff] }
  0xe8   :  { %538 = vmatpush.msrb.mxu0 %v521_v9  ;;  %558 = vmatpush.msrb.mxu1 %v500_v10  ;;  %v628_v9 = vld [vmem:[#allocation7 + $0x48] sm:$0xff]  ;;  %v627_v10 = vld [vmem:[#allocation7 + $0x40] sm:$0xff] }
  0xea   :  { %539 = vmatpush.msrb.mxu0 %v520_v11  ;;  %559 = vmatpush.msrb.mxu1 %v499_v13  ;;  %v626_v11 = vld [vmem:[#allocation7 + $0x38] sm:$0xff] }
  0xec   :  { %540 = vmatpush.msrb.mxu0 %v519_v15  ;;  %560 = vmatpush.msrb.mxu1 %v498_v22 }
  0xee   :  { %541 = vmatpush.msrb.mxu0 %v518_v47  ;;  %561 = vmatpush.msrb.mxu1 %v497_v48  ;;  %v751_v47 = vld [vmem:[#allocation10 + $0x160] sm:$0xff]  ;;  %v671_v48 = vld [vmem:[#allocation10 + $0x58] sm:$0xff] }
  0xf0   :  { %542 = vmatpush.msrb.mxu0 %v517_v51  ;;  %562 = vmatpush.msrb.mxu1 %v496_v52  ;;  %v750_v51 = vld [vmem:[#allocation10 + $0x158] sm:$0xff]  ;;  %v670_v52 = vld [vmem:[#allocation10 + $0x50] sm:$0xff] }
  0xf2   :  { %543 = vmatpush.msrb.mxu0 %v516_v54  ;;  %563 = vmatpush.msrb.mxu1 %v495_v55  ;;  %v749_v54 = vld [vmem:[#allocation10 + $0x150] sm:$0xff]  ;;  %v669_v55 = vld [vmem:[#allocation10 + $0x48] sm:$0xff] }
  0xf4   :  { %544 = vmatpush.msrb.mxu0 %v515_v61  ;;  %v748_v61 = vld [vmem:[#allocation10 + $0x148] sm:$0xff] }
 0x154   :  { %v377_v36 = vpop.f32.mrf.mxu0  ;;  %v397_v37 = vpop.f32.mrf.mxu1 }
 0x155   :  { %v378_v38 = vadd.f32 %v377_v36, %v347_v35  ;;  %v398_v40 = vadd.f32 %v397_v37, %v347_v35  ;;  %v590_v35 = vld [vmem:[#allocation6 + $0x170] sm:$0xff]  ;;  %v589_v36 = vld [vmem:[#allocation6 + $0x168] sm:$0xff]  ;;  %v588_v37 = vld [vmem:[#allocation6 + $0x160] sm:$0xff] }
 0x157   :  { %v1928_v41 = vmax.f32 %v378_v38, 0.0  ;;  %v1930_v42 = vmax.f32 %v398_v40, 0.0  ;;  %v587_v38 = vld [vmem:[#allocation6 + $0x158] sm:$0xff]  ;;  %v586_v40 = vld [vmem:[#allocation6 + $0x150] sm:$0xff] }
 0x159   :  { %430 = vrot.lane.b32.xlu1 %v1930_v42, %s1663_s4  ;;  %420 = vrot.lane.b32.xlu2 %v1928_v41, %s1664_s6 }
 0x15a   :  { %428 = vrot.lane.b32.xlu0 %v1928_v41, %s1663_s4 }
 0x161   :  { %412 = vrot.lane.b32.xlu1 %v1928_v41, %s1665_s26  ;;  %414 = vrot.lane.b32.xlu2 %v1930_v42, %s1665_s26 }
 0x162   :  { %422 = vrot.lane.b32.xlu0 %v1930_v42, %s1664_s6 }
 0x169   :  { %406 = vrot.lane.b32.xlu1 %v1930_v42, %s1666_s30  ;;  %438 = vperm.xlu2 %1457, %v403_v43   ;;  %v583_v43 = vld [vmem:[#allocation6 + $0x138] sm:$0xff] }
 0x16a   :  { %404 = vrot.lane.b32.xlu0 %v1928_v41, %s1666_s30 }
 0x1b3   :  { %v421_v63 = vpop.permute.xlu2 %420 }
 0x1bb   :  { %v415_v18 = vpop.permute.xlu2 %414 }
 0x1cb   :  { %v431_v62 = vpop.permute.xlu1 %430 }
 0x1cc   :  { %v429_v0 = vpop.permute.xlu0 %428 }
 0x1cd   :  { %v432_v3 = vsel %vm297_vm3, %v429_v0, %v431_v62  ;;  %v433_v4 = vsel %vm297_vm3, %v431_v62, %v429_v0  ;;  %v494_v62 = vld [vmem:[#allocation6 + $0x8] sm:$0xff]  ;;  %v514_v0 = vld [vmem:[#allocation6 + $0x80] sm:$0xff] }
 0x1ce   :  { %v434_v5 = vmul.f32 %v1878_v57, %v432_v3  ;;  %v435_v6 = vmul.f32 %v1878_v57, %v433_v4  ;;  %564 = vmatpush.msrb.mxu1 %v494_v62  ;;  %545 = vmatpush.msrb.mxu0 %v514_v0  ;;  %v634_v3 = vld [vmem:[#allocation7 + $0x78] sm:$0xff]  ;;  %v633_v4 = vld [vmem:[#allocation7 + $0x70] sm:$0xff]  ;;  %v668_v62 = vld [vmem:[#allocation10 + $0x40] sm:$0xff] }
 0x1cf   :  { %v747_v0 = vld [vmem:[#allocation10 + $0x140] sm:$0xff] }
 0x1d0   :  { %456 = vmatpush.msra.mxu2 %v434_v5  ;;  %476 = vmatpush.msra.mxu3 %v435_v6  ;;  %v632_v5 = vld [vmem:[#allocation7 + $0x68] sm:$0xff]  ;;  %v631_v6 = vld [vmem:[#allocation7 + $0x60] sm:$0xff] }
 0x1d1   :  { %565 = vmatpush.msrb.mxu1 %v493_v1  ;;  %v667_v1 = vld [vmem:[#allocation10 + $0x38] sm:$0xff] }
 0x1d3   :  { %v413_v12 = vpop.permute.xlu1 %412 }
 0x1d4   :  { %v423_v14 = vpop.permute.xlu0 %422  ;;  %v416_v23 = vsel %vm267_vm5, %v413_v12, %v415_v18  ;;  %v417_v24 = vsel %vm267_vm5, %v415_v18, %v413_v12  ;;  %v439_v12 = vpop.permute.xlu2 %438 }
 0x1d5   :  { %v424_v16 = vsel %vm282_vm4, %v421_v63, %v423_v14  ;;  %v425_v17 = vsel %vm282_vm4, %v423_v14, %v421_v63  ;;  %v418_v25 = vmul.f32 %v1885_v60, %v417_v24  ;;  %v419_v26 = vmul.f32 %v1885_v60, %v416_v23  ;;  %v577_v63 = vld [vmem:[#allocation6 + $0x108] sm:$0xff] }
 0x1d6   :  { %v426_v19 = vmul.f32 %v1881_v58, %v424_v16  ;;  %v427_v21 = vmul.f32 %v1881_v58, %v425_v17 }
 0x1d8   :  { %457 = vmatpush.msra.mxu2 %v426_v19  ;;  %477 = vmatpush.msra.mxu3 %v427_v21 }
 0x1da   :  { %458 = vmatpush.msra.mxu2 %v1928_v41  ;;  %478 = vmatpush.msra.mxu3 %v1930_v42  ;;  %v585_v41 = vld [vmem:[#allocation6 + $0x148] sm:$0xff]  ;;  %v584_v42 = vld [vmem:[#allocation6 + $0x140] sm:$0xff] }
 0x1db   :  { %v407_v27 = vpop.permute.xlu1 %406 }
 0x1dc   :  { %459 = vmatpush.msra.mxu2 %v418_v25  ;;  %479 = vmatpush.msra.mxu3 %v419_v26  ;;  %v405_v28 = vpop.permute.xlu0 %404 }
 0x1dd   :  { %v408_v29 = vsel %vm252_vm10, %v405_v28, %v407_v27  ;;  %v409_v30 = vsel %vm252_vm10, %v407_v27, %v405_v28 }
 0x1de   :  { %v410_v31 = vmul.f32 %v1912_v20, %v409_v30  ;;  %v411_v32 = vmul.f32 %v1912_v20, %v408_v29  ;;  %v625_v29 = vld [vmem:[#allocation7 + $0x30] sm:$0xff]  ;;  %v624_v30 = vld [vmem:[#allocation7 + $0x28] sm:$0xff] }
 0x1e0   :  { %460 = vmatpush.msra.mxu2 %v410_v31  ;;  %480 = vmatpush.msra.mxu3 %v411_v32  ;;  %v623_v31 = vld [vmem:[#allocation7 + $0x20] sm:$0xff]  ;;  %v620_v32 = vld [vmem:[#allocation7 + $0x8] sm:$0xff] }
 0x1e1   :  { %1411 = vmatmul.msk.f32.vlgmr.msra.gmra.mxu2 %vm441_vm14, %v402_v33  ;;  %1412 = vmatmul.msk.f32.vlgmr.msra.gmra.mxu3 %vm441_vm14, %v402_v33  ;;  %v619_v33 = vld [vmem:[#allocation7] sm:$0xff] }
 0x1e2   :  { %592 = vmatpush.msrb.mxu2 %v591_v34  ;;  %639 = vmatpush.msrb.mxu3 %v634_v3  ;;  %v675_v34 = vld [vmem:[#allocation10 + $0x78] sm:$0xff] }
 0x1e3   :  { %676 = vmatpush.msra.mxu0 %v675_v34  ;;  %v746_v3 = vld [vmem:[#allocation10 + $0x138] sm:$0xff] }
 0x1e4   :  { %593 = vmatpush.msrb.mxu2 %v590_v35  ;;  %640 = vmatpush.msrb.mxu3 %v633_v4  ;;  %v715_v35 = vld [vmem:[#allocation10 + $0xf8] sm:$0xff]  ;;  %v666_v4 = vld [vmem:[#allocation10 + $0x30] sm:$0xff] }
 0x1e5   :  { %716 = vmatpush.msra.mxu1 %v715_v35 }
 0x1e6   :  { %594 = vmatpush.msrb.mxu2 %v589_v36  ;;  %641 = vmatpush.msrb.mxu3 %v632_v5  ;;  %v754_v36 = vld [vmem:[#allocation10 + $0x178] sm:$0xff]  ;;  %v706_v5 = vld [vmem:[#allocation10 + $0xb0] sm:$0xff] }
 0x1e8   :  { %595 = vmatpush.msrb.mxu2 %v588_v37  ;;  %642 = vmatpush.msrb.mxu3 %v631_v6  ;;  %v674_v37 = vld [vmem:[#allocation10 + $0x70] sm:$0xff] }
 0x1e9   :  { %677 = vmatpush.msra.mxu0 %v674_v37  ;;  %v745_v6 = vld [vmem:[#allocation10 + $0x130] sm:$0xff] }
 0x1ea   :  { %596 = vmatpush.msrb.mxu2 %v587_v38  ;;  %643 = vmatpush.msrb.mxu3 %v630_v7  ;;  %v714_v38 = vld [vmem:[#allocation10 + $0xf0] sm:$0xff]  ;;  %v665_v7 = vld [vmem:[#allocation10 + $0x28] sm:$0xff] }
 0x1eb   :  { %717 = vmatpush.msra.mxu1 %v714_v38 }
 0x1ec   :  { %597 = vmatpush.msrb.mxu2 %v586_v40  ;;  %644 = vmatpush.msrb.mxu3 %v629_v8  ;;  %v753_v40 = vld [vmem:[#allocation10 + $0x170] sm:$0xff]  ;;  %v705_v8 = vld [vmem:[#allocation10 + $0xa8] sm:$0xff] }
 0x1ee   :  { %598 = vmatpush.msrb.mxu2 %v585_v41  ;;  %645 = vmatpush.msrb.mxu3 %v628_v9  ;;  %v673_v41 = vld [vmem:[#allocation10 + $0x68] sm:$0xff] }
 0x1ef   :  { %678 = vmatpush.msra.mxu0 %v673_v41  ;;  %v744_v9 = vld [vmem:[#allocation10 + $0x128] sm:$0xff] }
 0x1f0   :  { %599 = vmatpush.msrb.mxu2 %v584_v42  ;;  %646 = vmatpush.msrb.mxu3 %v627_v10  ;;  %v713_v42 = vld [vmem:[#allocation10 + $0xe8] sm:$0xff]  ;;  %v664_v10 = vld [vmem:[#allocation10 + $0x20] sm:$0xff] }
 0x1f1   :  { %718 = vmatpush.msra.mxu1 %v713_v42 }
 0x1f2   :  { %600 = vmatpush.msrb.mxu2 %v583_v43  ;;  %647 = vmatpush.msrb.mxu3 %v626_v11  ;;  %v752_v43 = vld [vmem:[#allocation10 + $0x168] sm:$0xff]  ;;  %v704_v11 = vld [vmem:[#allocation10 + $0xa0] sm:$0xff] }
 0x1f4   :  { %601 = vmatpush.msrb.mxu2 %v582_v45  ;;  %648 = vmatpush.msrb.mxu3 %v625_v29  ;;  %v672_v45 = vld [vmem:[#allocation10 + $0x60] sm:$0xff]  ;;  %v701_v29 = vld [vmem:[#allocation10 + $0x88] sm:$0xff] }
 0x1f5   :  { %679 = vmatpush.msra.mxu0 %v672_v45 }
 0x1f6   :  { %602 = vmatpush.msrb.mxu2 %v581_v46  ;;  %649 = vmatpush.msrb.mxu3 %v624_v30  ;;  %v712_v46 = vld [vmem:[#allocation10 + $0xe0] sm:$0xff]  ;;  %v740_v30 = vld [vmem:[#allocation10 + $0x108] sm:$0xff] }
 0x1f7   :  { %719 = vmatpush.msra.mxu1 %v712_v46  ;;  %680 = vmatpush.msra.mxu0 %v671_v48 }
 0x1f8   :  { %603 = vmatpush.msrb.mxu2 %v580_v50  ;;  %650 = vmatpush.msrb.mxu3 %v623_v31  ;;  %v711_v50 = vld [vmem:[#allocation10 + $0xd8] sm:$0xff]  ;;  %v660_v31 = vld [vmem:[#allocation10] sm:$0xff] }
 0x1f9   :  { %720 = vmatpush.msra.mxu1 %v711_v50  ;;  %681 = vmatpush.msra.mxu0 %v670_v52 }
 0x1fa   :  { %604 = vmatpush.msrb.mxu2 %v579_v53  ;;  %v710_v53 = vld [vmem:[#allocation10 + $0xd0] sm:$0xff] }
 0x1fb   :  { %721 = vmatpush.msra.mxu1 %v710_v53  ;;  %682 = vmatpush.msra.mxu0 %v669_v55  ;;  %v800_v55 = vld [vmem:[%s2291_s14] sm:$0xff] }
 0x1fc   :  { %605 = vmatpush.msrb.mxu2 %v578_v59  ;;  %v709_v59 = vld [vmem:[#allocation10 + $0xc8] sm:$0xff] }
 0x1fd   :  { %722 = vmatpush.msra.mxu1 %v709_v59  ;;  %683 = vmatpush.msra.mxu0 %v668_v62 }
 0x1fe   :  { %606 = vmatpush.msrb.mxu2 %v577_v63  ;;  %v708_v63 = vld [vmem:[#allocation10 + $0xc0] sm:$0xff] }
 0x1ff   :  { %723 = vmatpush.msra.mxu1 %v708_v63  ;;  %684 = vmatpush.msra.mxu0 %v667_v1 }
 0x200   :  { %607 = vmatpush.msrb.mxu2 %v576_v2  ;;  %v707_v2 = vld [vmem:[#allocation10 + $0xb8] sm:$0xff] }
 0x201   :  { %724 = vmatpush.msra.mxu1 %v707_v2  ;;  %685 = vmatpush.msra.mxu0 %v666_v4 }
 0x202   :  { %755 = vmatpush.msra.mxu2 %v754_v36  ;;  %v790_v36 = vld [vmem:[%s2289_s12] sm:$0x77]  ;;  %s1371_s12 = sshll.u32 %s1673_s17, 4  ;;  %s1372_s12 = int_to_ptr.vmem [resolvable:$true] %s1371_s12 }
 0x203   :  { %725 = vmatpush.msra.mxu1 %v706_v5  ;;  %686 = vmatpush.msra.mxu0 %v665_v7  ;;  %792 = vst [vmem:[#allocation1] ss:$2 sm:$0xff] %v790_v36 }
 0x204   :  { %756 = vmatpush.msra.mxu2 %v753_v40 }
 0x205   :  { %726 = vmatpush.msra.mxu1 %v705_v8  ;;  %687 = vmatpush.msra.mxu0 %v664_v10 }
 0x206   :  { %757 = vmatpush.msra.mxu2 %v752_v43 }
 0x207   :  { %727 = vmatpush.msra.mxu1 %v704_v11  ;;  %v799_v11 = vld [vmem:[#allocation12] sm:$0xff] }
 0x208   :  { %758 = vmatpush.msra.mxu2 %v751_v47 }
 0x20a   :  { %759 = vmatpush.msra.mxu2 %v750_v51  ;;  %v793_v43 = vld.sshfl [vmem:[#allocation1] sm:$0xff pattern:$0x75316420]  ;;  %v794_v47 = vld.sshfl [vmem:[#allocation1 + $0x8] sm:$0xff pattern:$0x75316420] }
 0x20c   :  { %760 = vmatpush.msra.mxu2 %v749_v54 }
 0x20e   :  { %761 = vmatpush.msra.mxu2 %v748_v61 }
 0x210   :  { %762 = vmatpush.msra.mxu2 %v747_v0 }
 0x212   :  { %763 = vmatpush.msra.mxu2 %v746_v3 }
 0x214   :  { %764 = vmatpush.msra.mxu2 %v745_v6 }
 0x216   :  { %765 = vmatpush.msra.mxu2 %v744_v9 }
 0x264   :  { %v462_v13 = vpop.f32.mrf.mxu2  ;;  %v482_v14 = vpop.f32.mrf.mxu3 }
 0x265   :  { %v463_v15 = vadd.f32 %v462_v13, %v439_v12  ;;  %v483_v16 = vadd.f32 %v482_v14, %v439_v12  ;;  %v743_v14 = vld [vmem:[#allocation10 + $0x120] sm:$0xff] }
 0x266   :  { %766 = vmatpush.msra.mxu2 %v743_v14 }
 0x267   :  { %v485_v17 = vmax.f32 %v463_v15, 0.0  ;;  %v486_v18 = vmax.f32 %v483_v16, 0.0  ;;  %v663_v15 = vld [vmem:[#allocation10 + $0x18] sm:$0xff] }
 0x268   :  { %v703_v16 = vld [vmem:[#allocation10 + $0x98] sm:$0xff]  ;;  %688 = vmatpush.msra.mxu0 %v663_v15 }
 0x269   :  { %v487_v19 = vadd.f32 %v485_v17, %v1846_v39  ;;  %v488_v21 = vadd.f32 %v486_v18, %v1854_v44  ;;  %v622_v39 = vld [vmem:[#allocation7 + $0x18] sm:$0xff]  ;;  %v621_v44 = vld [vmem:[#allocation7 + $0x10] sm:$0xff]  ;;  %728 = vmatpush.msra.mxu1 %v703_v16 }
 0x26a   :  { %651 = vmatpush.msrb.mxu3 %v622_v39  ;;  %v742_v17 = vld [vmem:[#allocation10 + $0x118] sm:$0xff]  ;;  %v700_v39 = vld [vmem:[#allocation10 + $0x80] sm:$0xff] }
 0x26b   :  { %v510_v22 = vrot.slane %v487_v19, 1  ;;  %v490_v23 = vrot.slane %v488_v21, 7  ;;  %v570_v24 = vrot.slane %v487_v19, 2  ;;  %v572_v25 = vrot.slane %v488_v21, 1  ;;  %767 = vmatpush.msra.mxu2 %v742_v17 }
 0x26c   :  { %652 = vmatpush.msrb.mxu3 %v621_v44  ;;  %v739_v44 = vld [vmem:[#allocation10 + $0x100] sm:$0xff] }
 0x26d   :  { %v512_v26 = vsel %vm338_vm6, %v510_v22, %v488_v21  ;;  %v492_v27 = vsel %vm338_vm6, %v487_v19, %v490_v23  ;;  %v574_v28 = vsel %vm338_vm6, %v570_v24, %v572_v25  ;;  %v1460_v19 = vld [vmem:[%s2326_s13] ss:$0 sm:$0xff]  ;;  %s2327_s13 = sld [smem:[#allocation33_spill]] }
 0x26e   :  { %546 = vmatmul.f32.vlgmr.msrb.gmra.mxu0 %v512_v26  ;;  %566 = vmatmul.f32.vlgmr.msrb.gmra.mxu1 %v492_v27  ;;  %v662_v25 = vld [vmem:[#allocation10 + $0x10] sm:$0xff] }
 0x26f   :  { %608 = vmatmul.f32.vlgmr.msrb.gmra.mxu2 %v574_v28  ;;  %653 = vmatpush.msrb.mxu3 %v620_v32  ;;  %v702_v26 = vld [vmem:[#allocation10 + $0x90] sm:$0xff]  ;;  %v661_v28 = vld [vmem:[#allocation10 + $0x8] sm:$0xff]  ;;  %v1461_v32 = vld [vmem:[#allocation9] ss:$0 sm:$0xff] }
 0x270   :  { %v741_v27 = vld [vmem:[#allocation10 + $0x110] sm:$0xff]  ;;  %689 = vmatpush.msra.mxu0 %v662_v25  ;;  %729 = vmatpush.msra.mxu1 %v702_v26 }
 0x271   :  { %654 = vmatpush.msrb.mxu3 %v619_v33  ;;  %768 = vmatpush.msra.mxu2 %v741_v27  ;;  %v889_v25 = vld [vmem:[%s2293_s16] sm:$0x7] }
 0x272   :  { %690 = vmatpush.msra.mxu0 %v661_v28  ;;  %730 = vmatpush.msra.mxu1 %v701_v29  ;;  %v958_v26 = vld [vmem:[%s2295_s18] sm:$0xff] }
 0x273   :  { %769 = vmatpush.msra.mxu2 %v740_v30 }
 0x274   :  { %691 = vmatpush.msra.mxu0 %v660_v31  ;;  %731 = vmatpush.msra.mxu1 %v700_v39 }
 0x275   :  { %770 = vmatpush.msra.mxu2 %v739_v44 }
 0x2eb   :  { %v547_v12 = vpop.f32.mrf.mxu0  ;;  %v567_v13 = vpop.f32.mrf.mxu1 }
 0x2ec   :  { %v568_v18 = vadd.f32 %v567_v13, %v547_v12 }
 0x2f2   :  { %v609_v21 = vpop.f32.mrf.mxu2 }
 0x2f3   :  { %v612_v22 = vadd.f32 %v609_v21, %v568_v18 }
 0x2f5   :  { %v617_v23 = vadd.f32 %v1460_v19, %v612_v22 }
 0x2f7   :  { %v618_v24 = vmax.f32 %v617_v23, 0.0 }
 0x2f9   :  { %655 = vmatmul.f32.vlgmr.msrb.gmra.mxu3 %v618_v24 }
 0x37c   :  { %v656_v33 = vpop.f32.mrf.mxu3 }
 0x37d   :  { %v657_v34 = vadd.f32 %v1461_v32, %v656_v33 }
 0x37f   :  { %v659_v35 = vmax.f32 %v657_v34, 0.0  ;;  %v888_v34 = vld [vmem:[%s2292_s15] sm:$0x7]  ;;  %s1669_s15 = smov 122  }
 0x381   :  { %692 = vmatmul.f32.vlgmr.msra.gmra.mxu0 %v659_v35  ;;  %732 = vmatmul.f32.vlgmr.msra.gmra.mxu1 %v659_v35 }
 0x382   :  { %771 = vmatmul.f32.vlgmr.msra.gmra.mxu2 %v659_v35 }
 0x3fe   :  { %v693_v37 = vpop.f32.mrf.mxu0  ;;  %v733_v38 = vpop.f32.mrf.mxu1 }
 0x3ff   :  { %v697_v40 = vrot.slane %v693_v37, 1  ;;  %v777_v41 = vrot.slane %v733_v38, 7 }
 0x401   :  { %v785_v48 = vsel %vm338_vm6, %v693_v37, %v777_v41  ;;  %v786_v50 = vsel %vm338_vm6, %v697_v40, %v733_v38 }
 0x405   :  { %v772_v42 = vpop.f32.mrf.mxu2 }
 0x406   :  { %v781_v45 = vrot.slane %v772_v42, 6  ;;  %v1414_v46 = vrot.slane %v772_v42, 7 }
 0x408   :  { %v788_v51 = vsel %vm787_vm15, %v785_v48, %v781_v45  ;;  %v789_v52 = vsel %vm787_vm15, %v786_v50, %v1414_v46 }
 0x409   :  { %v1995_v53 = vadd.f32 %v793_v43, %v788_v51  ;;  %v1997_v54 = vadd.f32 %v794_v47, %v789_v52 }
 0x40b   :  { %801 = vrot.lane.b32.xlu2 %v1995_v53, %s1665_s26  ;;  %809 = vrot.lane.b32.xlu0 %v1995_v53, %s1664_s6  ;;  %v819_v9 = vrot.slane %v1995_v53, 5  ;;  %v820_v12 = vrot.slane %v1997_v54, 5 }
 0x40c   :  { %811 = vrot.lane.b32.xlu1 %v1997_v54, %s1664_s6 }
 0x413   :  { %803 = vrot.lane.b32.xlu0 %v1997_v54, %s1665_s26 }
 0x414   :  { %835 = vperm.xlu1 %1458, %v800_v55  }
 0x465   :  { %v802_v2 = vpop.permute.xlu2 %801 }
 0x47d   :  { %v810_v59 = vpop.permute.xlu0 %809 }
 0x47e   :  { %v812_v61 = vpop.permute.xlu1 %811 }
 0x47f   :  { %v813_v62 = vsel %vm282_vm4, %v810_v59, %v812_v61  ;;  %v814_v1 = vsel %vm282_vm4, %v812_v61, %v810_v59 }
 0x480   :  { %v815_v63 = vmul.f32 %v1881_v58, %v813_v62  ;;  %v816_v6 = vmul.f32 %v1881_v58, %v814_v1 }
 0x482   :  { %v825_v0 = vrot.slane %v815_v63, 2  ;;  %v826_v14 = vrot.slane %v816_v6, 2 }
 0x484   :  { %1415 = vmatpush.msk.msra.mxu3 %vm338_vm6, %v825_v0 }
 0x485   :  { %v804_v3 = vpop.permute.xlu0 %803 }
 0x486   :  { %v805_v4 = vsel %vm267_vm5, %v802_v2, %v804_v3  ;;  %v806_v5 = vsel %vm267_vm5, %v804_v3, %v802_v2  ;;  %v836_v17 = vpop.permute.xlu1 %835 }
 0x487   :  { %v807_v7 = vmul.f32 %v1885_v60, %v806_v5  ;;  %v808_v8 = vmul.f32 %v1885_v60, %v805_v4  ;;  %v957_v4 = vld [vmem:[#allocation13] sm:$0xff] }
 0x489   :  { %v829_v10 = vsel %vm332_vm11, %v807_v7, %v819_v9  ;;  %v830_v15 = vsel %vm332_vm11, %v808_v8, %v820_v12 }
 0x48a   :  { %v831_v13 = vsel %vm335_vm12, %v829_v10, %v825_v0  ;;  %v832_v16 = vsel %vm335_vm12, %v830_v15, %v826_v14  ;;  %v1047_v15 = vld [vmem:[%s2297_s20] sm:$0xff] }
 0x48b   :  { %861 = vmatpush.msra.mxu3 %v831_v13 }
 0x48c   :  { %1416 = vmatmul.msk.f32.vlgmr.msra.gmra.mxu3 %vm838_vm0, %v799_v11 }
 0x48d   :  { %1417 = vmatpush.msk.msrb.mxu3 %vm338_vm6, %v826_v14  ;;  %v1048_v14 = vld [vmem:[%s2297_s20 + $0x8] sm:$0xff] }
 0x48f   :  { %881 = vmatpush.msrb.mxu3 %v832_v16  ;;  %v1101_v16 = vadd.s32 6, %v1869_v49 }
 0x491   :  { %vm1103_vm2 = vcmp.lt.s32.totalorder %v1101_v16, 128 }
 0x494   :  { %1418 = vmatmul.msk.f32.vlgmr.msrb.gmra.mxu3 %vm838_vm0, %v799_v11 }
 0x50f   :  { %v863_v18 = vpop.f32.mrf.mxu3 }
 0x510   :  { %v864_v19 = vadd.f32 %v863_v18, %v836_v17 }
 0x512   :  { %v886_v21 = vmax.f32 %v864_v19, 0.0  ;;  %v2112_v19 = vsel %vm1103_vm2, 1.0, %v1668_v56 }
 0x514   :  { %890 = vrot.lane.b32.xlu1 %v886_v21, %s1665_s26  ;;  %898 = vrot.lane.b32.xlu2 %v886_v21, %s1664_s6 }
 0x517   :  { %v883_v22 = vpop.f32.mrf.mxu3 }
 0x518   :  { %v884_v23 = vadd.f32 %v883_v22, %v836_v17  ;;  %v1086_v22 = vadd.s32 3, %v1869_v49 }
 0x51a   :  { %v887_v24 = vmax.f32 %v884_v23, 0.0 }
 0x51c   :  { %892 = vrot.lane.b32.xlu2 %v887_v24, %s1665_s26  ;;  %900 = vrot.lane.b32.xlu0 %v887_v24, %s1664_s6  ;;  %s1670_s6 = smov 125   ;;  %s1671_s26 = smov 3  }
 0x524   :  { %908 = vperm.xlu0 %1459, %v889_v25  }
 0x52c   :  { %993 = vperm.xlu0 %1459, %v958_v26  }
 0x56e   :  { %v899_v27 = vpop.permute.xlu2 %898 }
 0x576   :  { %v893_v31 = vpop.permute.xlu2 %892 }
 0x586   :  { %v891_v28 = vpop.permute.xlu1 %890 }
 0x587   :  { %v895_v44 = vsel %vm267_vm5, %v893_v31, %v891_v28  ;;  %v894_v36 = vsel %vm267_vm5, %v891_v28, %v893_v31  ;;  %vm1088_vm5 = vcmp.lt.s32.totalorder %v1086_v22, 128 }
 0x588   :  { %v896_v33 = vmul.f32 %v1885_v60, %v895_v44  ;;  %v897_v37 = vmul.f32 %v1885_v60, %v894_v36 }
 0x58e   :  { %v901_v29 = vpop.permute.xlu0 %900 }
 0x58f   :  { %v902_v30 = vsel %vm282_vm4, %v899_v27, %v901_v29  ;;  %v903_v32 = vsel %vm282_vm4, %v901_v29, %v899_v27  ;;  %vm1098_vm4 = vcmp.lt.s32.totalorder %v1869_v49, 122  ;;  %v1071_v27 = vadd.s32 4294967293, %v1869_v49 }
 0x590   :  { %v904_v39 = vmul.f32 %v1881_v58, %v902_v30  ;;  %v905_v35 = vmul.f32 %v1881_v58, %v903_v32  ;;  %v2124_v29 = vsel %vm1088_vm5, 1.0, %v1668_v56 }
 0x591   :  { %vm1072_vm9 = vcmp.ge.s32.totalorder %v1071_v27, 0 }
 0x592   :  { %928 = vmatpush.msra.mxu3 %v904_v39  ;;  %v1056_v39 = vadd.s32 4294967290, %v1869_v49 }
 0x594   :  { %929 = vmatpush.msra.mxu3 %v886_v21 }
 0x596   :  { %930 = vmatpush.msra.mxu3 %v896_v33  ;;  %v909_v38 = vpop.permute.xlu0 %908 }
 0x597   :  { %1419 = vmatmul.msk.f32.vlgmr.msra.gmra.mxu3 %vm911_vm1, %v888_v34 }
 0x598   :  { %948 = vmatpush.msrb.mxu3 %v905_v35  ;;  %v2135_v35 = vsel %vm1072_vm9, 1.0, %v1668_v56 }
 0x59a   :  { %949 = vmatpush.msrb.mxu3 %v887_v24 }
 0x59c   :  { %950 = vmatpush.msrb.mxu3 %v897_v37 }
 0x59e   :  { %v994_v7 = vpop.permute.xlu0 %993 }
 0x59f   :  { %1420 = vmatmul.msk.f32.vlgmr.msrb.gmra.mxu3 %vm911_vm1, %v888_v34 }
 0x61a   :  { %v932_v40 = vpop.f32.mrf.mxu3 }
 0x61b   :  { %v933_v41 = vadd.f32 %v932_v40, %v909_v38 }
 0x61d   :  { %v2060_v42 = vadd.f32 %v933_v41, %v1995_v53 }
 0x61f   :  { %967 = vrot.lane.b32.xlu1 %v2060_v42, %s1663_s4  ;;  %v977_v0 = vrot.slane %v2060_v42, 5 }
 0x622   :  { %v952_v58 = vpop.f32.mrf.mxu3 }
 0x623   :  { %v953_v43 = vadd.f32 %v952_v58, %v909_v38 }
 0x625   :  { %v2065_v45 = vadd.f32 %v953_v43, %v1997_v54 }
 0x627   :  { %969 = vrot.lane.b32.xlu2 %v2065_v45, %s1663_s4  ;;  %959 = vrot.lane.b32.xlu1 %v2060_v42, %s1666_s30  ;;  %v978_v1 = vrot.slane %v2065_v45, 5 }
 0x62f   :  { %961 = vrot.lane.b32.xlu2 %v2065_v45, %s1666_s30 }
 0x681   :  { %v970_v60 = vpop.permute.xlu2 %969 }
 0x689   :  { %v962_v54 = vpop.permute.xlu2 %961 }
 0x691   :  { %v968_v46 = vpop.permute.xlu1 %967 }
 0x692   :  { %v971_v47 = vsel %vm297_vm3, %v968_v46, %v970_v60  ;;  %v972_v48 = vsel %vm297_vm3, %v970_v60, %v968_v46 }
 0x693   :  { %v973_v50 = vmul.f32 %v1878_v57, %v971_v47  ;;  %v974_v51 = vmul.f32 %v1878_v57, %v972_v48 }
 0x695   :  { %v983_v52 = vrot.slane %v973_v50, 2  ;;  %v984_v53 = vrot.slane %v974_v51, 2  ;;  %v1045_v50 = vld [vmem:[%s2296_s19] sm:$0xff] }
 0x697   :  { %1421 = vmatpush.msk.msrb.mxu0 %vm338_vm6, %v983_v52  ;;  %1423 = vmatpush.msk.msrb.mxu1 %vm338_vm6, %v984_v53  ;;  %vm1083_vm6 = vcmp.lt.s32.totalorder %v1869_v49, 125 }
 0x699   :  { %v960_v55 = vpop.permute.xlu1 %959 }
 0x69a   :  { %v963_v59 = vsel %vm252_vm10, %v960_v55, %v962_v54  ;;  %v964_v61 = vsel %vm252_vm10, %v962_v54, %v960_v55 }
 0x69b   :  { %v965_v62 = vmul.f32 %v1912_v20, %v964_v61  ;;  %v966_v63 = vmul.f32 %v1912_v20, %v963_v59 }
 0x69d   :  { %v987_v2 = vsel %vm332_vm11, %v965_v62, %v977_v0  ;;  %v988_v3 = vsel %vm332_vm11, %v966_v63, %v978_v1  ;;  %vm1057_vm11 = vcmp.ge.s32.totalorder %v1056_v39, 0 }
 0x69e   :  { %v989_v5 = vsel %vm335_vm12, %v987_v2, %v983_v52  ;;  %v990_v6 = vsel %vm335_vm12, %v988_v3, %v984_v53  ;;  %vm1053_vm12 = vcmp.lt.s32.totalorder %v1869_v49, 6  ;;  %v2145_v41 = vsel %vm1057_vm11, 1.0, %v1668_v56  ;;  %v1046_v56 = vld [vmem:[%s2296_s19 + $0x8] sm:$0xff] }
 0x69f   :  { %1018 = vmatpush.msrb.mxu0 %v989_v5  ;;  %1038 = vmatpush.msrb.mxu1 %v990_v6  ;;  %v1176_v5 = vld [vmem:[%s2299_s22] sm:$0xff] }
 0x6a0   :  { %1422 = vmatmul.msk.f32.vlgmr.msrb.gmra.mxu0 %vm838_vm0, %v957_v4  ;;  %1424 = vmatmul.msk.f32.vlgmr.msrb.gmra.mxu1 %vm838_vm0, %v957_v4 }
 0x71d   :  { %v1020_v8 = vpop.f32.mrf.mxu0  ;;  %v1040_v9 = vpop.f32.mrf.mxu1 }
 0x71e   :  { %v1021_v10 = vadd.f32 %v1020_v8, %v994_v7  ;;  %v1041_v11 = vadd.f32 %v1040_v9, %v994_v7 }
 0x720   :  { %v1043_v12 = vmax.f32 %v1021_v10, 0.0  ;;  %v1044_v13 = vmax.f32 %v1041_v11, 0.0 }
 0x722   :  { %1096 = vrot.lane.b32.xlu2 %v1044_v13, %s1669_s15  ;;  %1079 = vrot.lane.b32.xlu0 %v1043_v12, %s1670_s6 }
 0x723   :  { %1094 = vrot.lane.b32.xlu1 %v1043_v12, %s1669_s15 }
 0x72a   :  { %1064 = vrot.lane.b32.xlu2 %v1043_v12, %s1671_s26  ;;  %1066 = vrot.lane.b32.xlu0 %v1044_v13, %s1671_s26 }
 0x72b   :  { %1081 = vrot.lane.b32.xlu1 %v1044_v13, %s1670_s6 }
 0x732   :  { %1051 = vrot.lane.b32.xlu2 %v1044_v13, %s1672_s23  ;;  %1116 = vperm.xlu0 %1459, %v1048_v14  }
 0x733   :  { %1049 = vrot.lane.b32.xlu1 %v1043_v12, %s1672_s23 }
 0x73b   :  { %1111 = vperm.xlu1 %1458, %v1047_v15  }
 0x77c   :  { %v1097_v17 = vpop.permute.xlu2 %1096 }
 0x784   :  { %v1065_v28 = vpop.permute.xlu2 %1064 }
 0x78c   :  { %v1052_v58 = vpop.permute.xlu2 %1051 }
 0x794   :  { %v1080_v18 = vpop.permute.xlu0 %1079 }
 0x795   :  { %v1095_v21 = vpop.permute.xlu1 %1094 }
 0x796   :  { %v1099_v23 = vsel %vm1098_vm4, %v1095_v21, %v1097_v17  ;;  %v1100_v24 = vsel %vm1098_vm4, %v1097_v17, %v1095_v21 }
 0x797   :  { %v1107_v25 = vmul.f32 %v2112_v19, %v1099_v23  ;;  %v1108_v26 = vmul.f32 %v2112_v19, %v1100_v24 }
 0x799   :  { %1136 = vmatpush.msrb.mxu2 %v1107_v25  ;;  %1159 = vmatpush.msra.mxu3 %v1108_v26 }
 0x79c   :  { %v1067_v30 = vpop.permute.xlu0 %1066 }
 0x79d   :  { %v1082_v31 = vpop.permute.xlu1 %1081  ;;  %v1069_v36 = vsel %vm1068_vm8, %v1065_v28, %v1067_v30  ;;  %v1070_v37 = vsel %vm1068_vm8, %v1067_v30, %v1065_v28 }
 0x79e   :  { %v1084_v44 = vsel %vm1083_vm6, %v1080_v18, %v1082_v31  ;;  %v1085_v32 = vsel %vm1083_vm6, %v1082_v31, %v1080_v18  ;;  %v1077_v38 = vmul.f32 %v2135_v35, %v1070_v37  ;;  %v1078_v40 = vmul.f32 %v2135_v35, %v1069_v36 }
 0x79f   :  { %v1092_v33 = vmul.f32 %v2124_v29, %v1084_v44  ;;  %v1093_v34 = vmul.f32 %v2124_v29, %v1085_v32 }
 0x7a1   :  { %1137 = vmatpush.msrb.mxu2 %v1092_v33  ;;  %1160 = vmatpush.msra.mxu3 %v1093_v34 }
 0x7a3   :  { %1138 = vmatpush.msrb.mxu2 %v1043_v12  ;;  %1161 = vmatpush.msra.mxu3 %v1044_v13 }
 0x7a4   :  { %v1117_v62 = vpop.permute.xlu0 %1116 }
 0x7a5   :  { %1139 = vmatpush.msrb.mxu2 %v1077_v38  ;;  %1162 = vmatpush.msra.mxu3 %v1078_v40  ;;  %v1050_v43 = vpop.permute.xlu1 %1049 }
 0x7a6   :  { %v1054_v60 = vsel %vm1053_vm12, %v1050_v43, %v1052_v58  ;;  %v1055_v46 = vsel %vm1053_vm12, %v1052_v58, %v1050_v43 }
 0x7a7   :  { %v1062_v47 = vmul.f32 %v2145_v41, %v1055_v46  ;;  %v1063_v48 = vmul.f32 %v2145_v41, %v1054_v60 }
 0x7a9   :  { %1140 = vmatpush.msrb.mxu2 %v1062_v47  ;;  %1163 = vmatpush.msra.mxu3 %v1063_v48 }
 0x7aa   :  { %1429 = vmatmul.msk.f32.vlgmr.msrb.gmra.mxu2 %vm441_vm14, %v1045_v50  ;;  %1431 = vmatmul.msk.f32.vlgmr.msra.gmra.mxu3 %vm441_vm14, %v1045_v50 }
 0x7ad   :  { %v1112_v51 = vpop.permute.xlu1 %1111 }
 0x7b2   :  { %1430 = vmatmul.msk.f32.gmra.mxu2 %vm441_vm14, %v1046_v56  ;;  %1432 = vmatmul.msk.f32.gmra.mxu3 %vm441_vm14, %v1046_v56 }
 0x82d   :  { %v1142_v52 = vpop.f32.mrf.mxu2  ;;  %v1165_v53 = vpop.f32.mrf.mxu3 }
 0x82e   :  { %v1143_v54 = vadd.f32 %v1142_v52, %v1112_v51  ;;  %v1166_v55 = vadd.f32 %v1165_v53, %v1112_v51 }
 0x830   :  { %v2163_v59 = vmax.f32 %v1143_v54, 0.0  ;;  %v2165_v61 = vmax.f32 %v1166_v55, 0.0 }
 0x832   :  { %1213 = vrot.lane.b32.xlu0 %v2165_v61, %s1670_s6  ;;  %1229 = vrot.lane.b32.xlu2 %v2165_v61, %s1669_s15 }
 0x833   :  { %1225 = vrot.lane.b32.xlu1 %v2163_v59, %s1669_s15 }
 0x835   :  { %v1168_v63 = vpop.f32.mrf.mxu3  ;;  %v1145_v2 = vpop.f32.mrf.mxu2 }
 0x836   :  { %v1169_v0 = vadd.f32 %v1168_v63, %v1117_v62  ;;  %v1146_v3 = vadd.f32 %v1145_v2, %v1117_v62 }
 0x838   :  { %v1174_v1 = vmax.f32 %v1169_v0, 0.0  ;;  %v1173_v4 = vmax.f32 %v1146_v3, 0.0 }
 0x83a   :  { %1231 = vrot.lane.b32.xlu0 %v1174_v1, %s1669_s15  ;;  %1209 = vrot.lane.b32.xlu2 %v2163_v59, %s1670_s6 }
 0x83b   :  { %1197 = vrot.lane.b32.xlu1 %v2165_v61, %s1671_s26 }
 0x842   :  { %1211 = vrot.lane.b32.xlu0 %v1173_v4, %s1670_s6  ;;  %1227 = vrot.lane.b32.xlu2 %v1173_v4, %s1669_s15 }
 0x843   :  { %1215 = vrot.lane.b32.xlu1 %v1174_v1, %s1670_s6 }
 0x84a   :  { %1193 = vrot.lane.b32.xlu0 %v2163_v59, %s1671_s26  ;;  %1199 = vrot.lane.b32.xlu2 %v1174_v1, %s1671_s26 }
 0x84b   :  { %1195 = vrot.lane.b32.xlu1 %v1173_v4, %s1671_s26 }
 0x852   :  { %1183 = vrot.lane.b32.xlu0 %v1174_v1, %s1672_s23  ;;  %1179 = vrot.lane.b32.xlu2 %v1173_v4, %s1672_s23 }
 0x853   :  { %1177 = vrot.lane.b32.xlu1 %v2163_v59, %s1672_s23 }
 0x85a   :  { %1243 = vperm.xlu0 %1459, %v1176_v5   ;;  %1181 = vrot.lane.b32.xlu2 %v2165_v61, %s1672_s23 }
 0x88c   :  { %v1230_v6 = vpop.permute.xlu2 %1229 }
 0x894   :  { %v1210_v7 = vpop.permute.xlu2 %1209 }
 0x89c   :  { %v1228_v10 = vpop.permute.xlu2 %1227 }
 0x8a4   :  { %v1214_v8 = vpop.permute.xlu0 %1213  ;;  %v1200_v23 = vpop.permute.xlu2 %1199 }
 0x8a5   :  { %v1226_v9 = vpop.permute.xlu1 %1225  ;;  %v1217_v26 = vsel %vm1083_vm6, %v1210_v7, %v1214_v8  ;;  %v1219_v27 = vsel %vm1083_vm6, %v1214_v8, %v1210_v7 }
 0x8a6   :  { %v1233_v12 = vsel %vm1098_vm4, %v1226_v9, %v1230_v6  ;;  %v1235_v13 = vsel %vm1098_vm4, %v1230_v6, %v1226_v9  ;;  %v1221_v39 = vmul.f32 %v2124_v29, %v1217_v26  ;;  %v1222_v44 = vmul.f32 %v2124_v29, %v1219_v27 }
 0x8a7   :  { %v1237_v21 = vmul.f32 %v2112_v19, %v1233_v12  ;;  %v1238_v22 = vmul.f32 %v2112_v19, %v1235_v13 }
 0x8ac   :  { %v1232_v11 = vpop.permute.xlu0 %1231  ;;  %v1180_v32 = vpop.permute.xlu2 %1179 }
 0x8ad   :  { %v1234_v14 = vsel %vm1098_vm4, %v1228_v10, %v1232_v11  ;;  %v1236_v15 = vsel %vm1098_vm4, %v1232_v11, %v1228_v10  ;;  %v1198_v16 = vpop.permute.xlu1 %1197 }
 0x8ae   :  { %v1239_v17 = vmul.f32 %v2112_v19, %v1234_v14  ;;  %v1240_v18 = vmul.f32 %v2112_v19, %v1236_v15 }
 0x8b0   :  { %1256 = vmatpush.msra.mxu0 %v1239_v17  ;;  %1276 = vmatpush.msra.mxu1 %v1240_v18 }
 0x8b2   :  { %1257 = vmatpush.msra.mxu0 %v1237_v21  ;;  %1277 = vmatpush.msra.mxu1 %v1238_v22 }
 0x8b4   :  { %v1212_v24 = vpop.permute.xlu0 %1211  ;;  %v1182_v47 = vpop.permute.xlu2 %1181 }
 0x8b5   :  { %v1216_v25 = vpop.permute.xlu1 %1215 }
 0x8b6   :  { %v1218_v28 = vsel %vm1083_vm6, %v1212_v24, %v1216_v25  ;;  %v1220_v30 = vsel %vm1083_vm6, %v1216_v25, %v1212_v24 }
 0x8b7   :  { %v1223_v19 = vmul.f32 %v2124_v29, %v1218_v28  ;;  %v1224_v31 = vmul.f32 %v2124_v29, %v1220_v30 }
 0x8b9   :  { %1258 = vmatpush.msra.mxu0 %v1223_v19  ;;  %1278 = vmatpush.msra.mxu1 %v1224_v31 }
 0x8bb   :  { %1259 = vmatpush.msra.mxu0 %v1221_v39  ;;  %1279 = vmatpush.msra.mxu1 %v1222_v44 }
 0x8bc   :  { %v1194_v33 = vpop.permute.xlu0 %1193 }
 0x8bd   :  { %1260 = vmatpush.msra.mxu0 %v1173_v4  ;;  %1280 = vmatpush.msra.mxu1 %v1174_v1  ;;  %v1196_v34 = vpop.permute.xlu1 %1195  ;;  %v1201_v36 = vsel %vm1068_vm8, %v1194_v33, %v1198_v16  ;;  %v1203_v37 = vsel %vm1068_vm8, %v1198_v16, %v1194_v33 }
 0x8be   :  { %v1202_v38 = vsel %vm1068_vm8, %v1196_v34, %v1200_v23  ;;  %v1204_v29 = vsel %vm1068_vm8, %v1200_v23, %v1196_v34  ;;  %v1205_v43 = vmul.f32 %v2135_v35, %v1203_v37  ;;  %v1206_v60 = vmul.f32 %v2135_v35, %v1201_v36 }
 0x8bf   :  { %v1207_v40 = vmul.f32 %v2135_v35, %v1204_v29  ;;  %v1208_v58 = vmul.f32 %v2135_v35, %v1202_v38  ;;  %1261 = vmatpush.msra.mxu0 %v2163_v59  ;;  %1281 = vmatpush.msra.mxu1 %v2165_v61  ;;  %v1175_v59 = vld [vmem:[%s2298_s21] sm:$0xff] }
 0x8c1   :  { %1262 = vmatpush.msra.mxu0 %v1207_v40  ;;  %1282 = vmatpush.msra.mxu1 %v1208_v58 }
 0x8c3   :  { %1263 = vmatpush.msra.mxu0 %v1205_v43  ;;  %1283 = vmatpush.msra.mxu1 %v1206_v60 }
 0x8c4   :  { %v1184_v46 = vpop.permute.xlu0 %1183 }
 0x8c5   :  { %v1186_v48 = vsel %vm1053_vm12, %v1180_v32, %v1184_v46  ;;  %v1188_v50 = vsel %vm1053_vm12, %v1184_v46, %v1180_v32  ;;  %v1178_v56 = vpop.permute.xlu1 %1177 }
 0x8c6   :  { %v1191_v51 = vmul.f32 %v2145_v41, %v1188_v50  ;;  %v1192_v52 = vmul.f32 %v2145_v41, %v1186_v48  ;;  %v1185_v35 = vsel %vm1053_vm12, %v1178_v56, %v1182_v47  ;;  %v1187_v53 = vsel %vm1053_vm12, %v1182_v47, %v1178_v56 }
 0x8c7   :  { %v1189_v54 = vmul.f32 %v2145_v41, %v1187_v53  ;;  %v1190_v55 = vmul.f32 %v2145_v41, %v1185_v35  ;;  %v1293_v41 = vld [vmem:[%s2327_s13] sm:$0x7] }
 0x8c8   :  { %1264 = vmatpush.msra.mxu0 %v1191_v51  ;;  %1284 = vmatpush.msra.mxu1 %v1192_v52 }
 0x8ca   :  { %1265 = vmatpush.msra.mxu0 %v1189_v54  ;;  %1285 = vmatpush.msra.mxu1 %v1190_v55 }
 0x8cb   :  { %1433 = vmatmul.msk.f32.vlgmr.msra.gmra.mxu0 %vm1246_vm13, %v1175_v59  ;;  %1434 = vmatmul.msk.f32.vlgmr.msra.gmra.mxu1 %vm1246_vm13, %v1175_v59 }
 0x8cc   :  { %v1244_v61 = vpop.permute.xlu0 %1243 }
 0x948   :  { %v1267_v62 = vpop.f32.mrf.mxu0  ;;  %v1287_v63 = vpop.f32.mrf.mxu1 }
 0x949   :  { %v1268_v0 = vadd.f32 %v1267_v62, %v1244_v61  ;;  %v1288_v1 = vadd.f32 %v1287_v63, %v1244_v61 }
 0x94b   :  { %v1290_v2 = vmax.f32 %v1268_v0, 0.0  ;;  %v1291_v3 = vmax.f32 %v1288_v1, 0.0 }
 0x94d   :  { %1294 = vrot.lane.b32.xlu0 %v1290_v2, %s1666_s30  ;;  %1302 = vrot.lane.b32.xlu1 %v1290_v2, %s1663_s4 }
 0x94e   :  { %1304 = vrot.lane.b32.xlu2 %v1291_v3, %s1663_s4 }
 0x955   :  { %1296 = vrot.lane.b32.xlu1 %v1291_v3, %s1666_s30 }
 0x956   :  { %1312 = vperm.xlu2 %1457, %v1293_v41  }
 0x9a8   :  { %v1305_v4 = vpop.permute.xlu2 %1304 }
 0x9b0   :  { %v1313_v16 = vpop.permute.xlu2 %1312 }
 0x9bf   :  { %v1303_v5 = vpop.permute.xlu1 %1302  ;;  %v1295_v10 = vpop.permute.xlu0 %1294 }
 0x9c0   :  { %v1306_v6 = vsel %vm297_vm3, %v1303_v5, %v1305_v4  ;;  %v1307_v7 = vsel %vm297_vm3, %v1305_v4, %v1303_v5 }
 0x9c1   :  { %v1308_v8 = vmul.f32 %v1878_v57, %v1306_v6  ;;  %v1309_v9 = vmul.f32 %v1878_v57, %v1307_v7  ;;  %v1292_v57 = vld [vmem:[%s2328_s3] sm:$0x7] }
 0x9c3   :  { %1331 = vmatpush.msra.mxu2 %v1308_v8  ;;  %1351 = vmatpush.msrb.mxu3 %v1309_v9 }
 0x9c5   :  { %1332 = vmatpush.msra.mxu2 %v1290_v2  ;;  %1352 = vmatpush.msrb.mxu3 %v1291_v3 }
 0x9c7   :  { %v1297_v11 = vpop.permute.xlu1 %1296 }
 0x9c8   :  { %v1298_v12 = vsel %vm252_vm10, %v1295_v10, %v1297_v11  ;;  %v1299_v13 = vsel %vm252_vm10, %v1297_v11, %v1295_v10 }
 0x9c9   :  { %v1300_v14 = vmul.f32 %v1912_v20, %v1299_v13  ;;  %v1301_v15 = vmul.f32 %v1912_v20, %v1298_v12 }
 0x9cb   :  { %1333 = vmatpush.msra.mxu2 %v1300_v14  ;;  %1353 = vmatpush.msrb.mxu3 %v1301_v15 }
 0x9cc   :  { %1435 = vmatmul.msk.f32.vlgmr.msra.gmra.mxu2 %vm911_vm1, %v1292_v57  ;;  %1436 = vmatmul.msk.f32.vlgmr.msrb.gmra.mxu3 %vm911_vm1, %v1292_v57 }
 0xa4f   :  { %v1335_v17 = vpop.f32.mrf.mxu2  ;;  %v1355_v18 = vpop.f32.mrf.mxu3 }
 0xa50   :  { %v1336_v21 = vadd.f32 %v1335_v17, %v1313_v16  ;;  %v1356_v49 = vadd.f32 %v1355_v18, %v1313_v16 }
 0xa52   :  { %v1359_v22 = vadd.f32 %v1356_v49, %v2065_v45  ;;  %v1358_v20 = vadd.f32 %v1336_v21, %v2060_v42 }
 0xa54   :  { %v1362_v23 = vrot.slane %v1359_v22, 4 }
 0xa56   :  { %v1363_v24 = vsel %vm341_vm7, %v1358_v20, %v1362_v23 }
 0xa57   :  { %1365 = vst [vmem:[#allocation15] sm:$0x77] %v1363_v24 }
 0xa58   :  { %1376 = dma.vmem_to_hbm [thread:$0]  %s1372_s12, 128, %s1374_s28, [#allocation4]  }
 0xa59   :  { %1652 = dma.done.wait [#allocation4], 128  }
 0xa5a   :  { %1653 = vsyncadd [#allocation4], 4294967168 }
 0xa5b   :  { %1381 = vsyncpa [#allocation3], 1 }
 0xa5c   :  { %1382 = vsyncpa [#allocation8], 1 }
 0xa5d   :  { %1383 = vsyncpa [#allocation11], 1 }
 0xa5e   :  { %1384 = vsyncpa [#allocation14], 1 }
 0xa5f   :  { %1385 = vsyncpa [#allocation4], 1 }
 0xa60   :  { %1386 = vsyncpa [#allocation5], 1 }

</bundles_post_ra>
